<compile_context>
chip_gen: v6e
topology: v6e:2x2x1
jax: 0.10.0
libtpu: 0.0.40
codegen_flags: <defaults>
</compile_context>

<pallas_src>
import functools

import jax
import jax.numpy as jnp
import numpy as np
from jax.experimental import pallas as pl
from jax.experimental.pallas import tpu as pltpu

KS = 3              # kernel size parsed from 'spadebatch3x3'
PW = KS // 2        # conv padding
NHIDDEN = 128       # hidden width of the shared MLP
EPS = 1e-5          # BatchNorm2d default eps

CONV1_CHUNK = 256       # flat columns per conv1 chunk (keeps (128, chunk) acc small)
ROW_BLOCK_COLS = 512    # target padded columns per gamma/beta row block


# ---------------------------------------------------------------------------
# Fused SPADE kernel: one batch element per grid step, channels on sublanes.
#   actv  = relu(conv3x3(segmap; w1) + b1)
#   gamma = conv3x3(actv; wg) + bg ; beta = conv3x3(actv; wb) + bb  (fused)
#   out   = (x - mean) * invstd * (1 + gamma) + beta
# ---------------------------------------------------------------------------
def _spade_kernel(H, W, WP, CN, segi_ref, x_ref, mask_ref, w1_ref, b1_ref,
                  wgb_ref, bgb_ref, mean_ref, invstd_ref, out_ref, apad_ref):
    M1 = H * WP                    # padded-width-flat spatial length
    LSEG = apad_ref.shape[1]       # = (H + 2) * WP + 2
    INT = WP + 1                   # interior start inside the padded activation
    MAXOFF = 2 * WP + 2            # largest conv tap offset
    C2 = 2 * CN
    offs = [ky * WP + kx for ky in range(KS) for kx in range(KS)]

    # Zero only the pad-border lanes of the activation scratch; the interior is
    # fully overwritten below (no full-buffer memset per grid step).
    apad_ref[:, 0:INT] = jnp.zeros((NHIDDEN, INT), jnp.float32)
    apad_ref[:, INT + M1:LSEG] = jnp.zeros((NHIDDEN, LSEG - INT - M1),
                                           jnp.float32)

    # ---- conv1: label_nc -> 128, bias + ReLU, chunked over flat columns ----
    # One MXU matmul per chunk against the wrapper-built segmap im2col.
    w1 = w1_ref[...]               # (128, 9*CL)
    b1 = b1_ref[...]               # (128, 1)
    for c0 in range(0, M1, CONV1_CHUNK):
        c1 = min(c0 + CONV1_CHUNK, M1)
        acc = jnp.dot(w1, segi_ref[0, :, c0:c1],
                      preferred_element_type=jnp.float32)        # (128, chunk)
        # The mask zeroes the WP-W wrap-around columns so they act as the zero
        # padding for the gamma/beta convolution below.
        actv = jnp.maximum(acc + b1, 0.0) * mask_ref[:, c0:c1]
        apad_ref[:, INT + c0:INT + c1] = actv

    # ---- fused gamma/beta conv (128 -> 2*CN) + BN modulation, row blocks ---
    wgb = wgb_ref[...]             # (9*2*CN, 128): all 9 taps, gamma|beta fused
    bgb = bgb_ref[...]             # (2*CN, 1)
    mean = mean_ref[...]           # (CN, 1)
    invstd = invstd_ref[...]       # (CN, 1)

    rb = max(1, ROW_BLOCK_COLS // WP)           # rows per block
    for r0 in range(0, H, rb):
        r1 = min(r0 + rb, H)
        cols = (r1 - r0) * WP
        base = r0 * WP
        # Single matmul over an UNSHIFTED activation slab; the 9 tap shifts are
        # applied afterwards to the small (2*CN, cols) partial sums instead of
        # to the (128, cols) activation operand.
        slab = apad_ref[:, base:base + cols + MAXOFF]        # (128, cols+MAXOFF)
        part = jnp.dot(wgb, slab,
                       preferred_element_type=jnp.float32)   # (72, cols+MAXOFF)
        gb = bgb                                             # bias as init
        for t in range(KS * KS):
            off = offs[t]
            gb = gb + part[t * C2:(t + 1) * C2, off:off + cols]
        gamma = gb[0:CN]                                     # (CN, cols)
        beta = gb[CN:C2]

        # Per row: drop the WP-W pad columns, normalize x, modulate, store.
        # (At realistic W -- multiple of 128 -- these stores are lane-dense.)
        for r in range(r0, r1):
            lc = (r - r0) * WP
            xr = x_ref[0, :, r * W:(r + 1) * W]              # (CN, W)
            xn = (xr - mean) * invstd
            out_ref[0, :, r * W:(r + 1) * W] = (
                xn * (1.0 + gamma[:, lc:lc + W]) + beta[:, lc:lc + W])


# ---------------------------------------------------------------------------
# Glue
# ---------------------------------------------------------------------------
def _nearest_resize_nchw(seg, H, W):
    # PyTorch F.interpolate(mode='nearest'): src = floor(dst * in / out)
    Hs, Ws = seg.shape[2], seg.shape[3]
    hi = (jnp.arange(H) * Hs) // H
    wi = (jnp.arange(W) * Ws) // W
    return seg[:, :, hi][:, :, :, wi]


def spade_forward(x_nchw, seg_nchw, params):
    w1, b1, wg, bg, wb, bb = params            # conv weights in HWIO layout
    N, CN, H, W = x_nchw.shape
    CL = seg_nchw.shape[1]
    WP = W + 2 * PW                            # padded row stride
    HP = H + 2 * PW
    M1 = H * WP                                # padded-width-flat spatial length
    LSEG = HP * WP + 2                         # padded flat length (+2 for last taps)

    x32 = x_nchw.astype(jnp.float32)
    xf = x32.reshape(N, CN, H * W)             # free reshape of NCHW (no HBM copy)

    # BatchNorm2d(affine=False) training-mode batch statistics (biased var):
    # plain XLA reduction (cheaper than a dedicated stats kernel launch).
    mean = jnp.mean(x32, axis=(0, 2, 3))
    var = jnp.var(x32, axis=(0, 2, 3))
    invstd = jax.lax.rsqrt(var + EPS)
    mean = mean.reshape(CN, 1)
    invstd = invstd.reshape(CN, 1)

    # segmap glue (tiny, label_nc channels): nearest resize -> zero pad ->
    # flatten -> im2col over the 9 taps so the kernel's conv1 is one matmul.
    seg32 = seg_nchw.astype(jnp.float32)
    segr = _nearest_resize_nchw(seg32, H, W)                        # (N, CL, H, W)
    segp = jnp.pad(segr, ((0, 0), (0, 0), (PW, PW), (PW, PW)))      # (N, CL, HP, WP)
    segflat = jnp.pad(segp.reshape(N, CL, HP * WP),
                      ((0, 0), (0, 0), (0, LSEG - HP * WP)))        # (N, CL, LSEG)
    offs = [ky * WP + kx for ky in range(KS) for kx in range(KS)]
    seg_i2c = jnp.stack([segflat[:, :, o:o + M1] for o in offs], axis=1)
    seg_i2c = seg_i2c.reshape(N, KS * KS * CL, M1)                  # (N, 9*CL, M1)

    # weights / biases rearranged for the channels-on-sublane layout.
    w1t = jnp.transpose(w1, (3, 0, 1, 2)).reshape(NHIDDEN, KS * KS * CL)
    b1t = b1.reshape(NHIDDEN, 1)
    wgt = jnp.transpose(wg, (0, 1, 3, 2)).reshape(KS * KS, CN, NHIDDEN)
    wbt = jnp.transpose(wb, (0, 1, 3, 2)).reshape(KS * KS, CN, NHIDDEN)
    wgb = jnp.concatenate([wgt, wbt], axis=1).reshape(KS * KS * 2 * CN, NHIDDEN)
    bgb = jnp.concatenate([bg, bb]).reshape(2 * CN, 1)

    # mask of valid (non wrap-around) columns in the padded-width-flat layout.
    mask = ((jnp.arange(M1) % WP) < W).astype(jnp.float32).reshape(1, M1)

    kernel = functools.partial(_spade_kernel, H, W, WP, CN)
    # TODO(synk): for very large H*W (v7x's 64 MiB VMEM / 2 TensorCores) add a
    # row-tile grid axis with a 1-row halo instead of whole-image blocks.
    outf = pl.pallas_call(
        kernel,
        out_shape=jax.ShapeDtypeStruct((N, CN, H * W), jnp.float32),
        grid_spec=pltpu.PrefetchScalarGridSpec(
            num_scalar_prefetch=0,
            grid=(N,),
            in_specs=[
                pl.BlockSpec((1, KS * KS * CL, M1), lambda n: (n, 0, 0)),   # seg im2col
                pl.BlockSpec((1, CN, H * W), lambda n: (n, 0, 0)),          # x (N,C,HW)
                pl.BlockSpec((1, M1), lambda n: (0, 0)),                    # column mask
                pl.BlockSpec((NHIDDEN, KS * KS * CL), lambda n: (0, 0)),    # w1^T
                pl.BlockSpec((NHIDDEN, 1), lambda n: (0, 0)),               # b1
                pl.BlockSpec((KS * KS * 2 * CN, NHIDDEN), lambda n: (0, 0)),  # wg|wb ^T
                pl.BlockSpec((2 * CN, 1), lambda n: (0, 0)),                # bg|bb
                pl.BlockSpec((CN, 1), lambda n: (0, 0)),                    # mean
                pl.BlockSpec((CN, 1), lambda n: (0, 0)),                    # invstd
            ],
            out_specs=pl.BlockSpec((1, CN, H * W), lambda n: (n, 0, 0)),
            scratch_shapes=[pltpu.VMEM((NHIDDEN, LSEG), jnp.float32)]),
        compiler_params=pltpu.CompilerParams(
            dimension_semantics=("parallel",)),
    )(seg_i2c, xf, mask, w1t, b1t, wgb, bgb, mean, invstd)

    return outf.reshape(N, CN, H, W)


# ---------------------------------------------------------------------------
# Pure-JAX reference (for correctness check)
# ---------------------------------------------------------------------------
def spade_reference(x_nchw, seg_nchw, params):
    w1, b1, wg, bg, wb, bb = params
    x = jnp.transpose(x_nchw, (0, 2, 3, 1)).astype(jnp.float32)
    N, H, W, CN = x.shape
    mean = jnp.mean(x, axis=(0, 1, 2))
    var = jnp.mean((x - mean) ** 2, axis=(0, 1, 2))       # biased (training BN)
    xn = (x - mean) / jnp.sqrt(var + EPS)
    segr = _nearest_resize_nchw(seg_nchw.astype(jnp.float32), H, W)
    segr = jnp.transpose(segr, (0, 2, 3, 1))
    dn = ('NHWC', 'HWIO', 'NHWC')
    conv = lambda inp, w: jax.lax.conv_general_dilated(
        inp, w, (1, 1), 'SAME', dimension_numbers=dn,
        precision=jax.lax.Precision.HIGHEST)
    actv = jax.nn.relu(conv(segr, w1) + b1)
    gamma = conv(actv, wg) + bg
    beta = conv(actv, wb) + bb
    out = xn * (1.0 + gamma) + beta
    return jnp.transpose(out, (0, 3, 1, 2))


if __name__ == "__main__":
    key = jax.random.PRNGKey(0)
    ks = jax.random.split(key, 8)

    # SPADE('spadebatch3x3', norm_nc=4, label_nc=3); x spatial 16x16, segmap 8x8
    N, CN, H, W = 2, 4, 16, 16
    CL, HS, WS = 3, 8, 8

    x = jax.random.normal(ks[0], (N, CN, H, W), jnp.float32)
    seg = jax.random.normal(ks[1], (N, CL, HS, WS), jnp.float32)

    # deterministic synthetic parameters (HWIO conv layout)
    w1 = jax.random.normal(ks[2], (KS, KS, CL, NHIDDEN), jnp.float32) * 0.10
    b1 = jax.random.normal(ks[3], (NHIDDEN,), jnp.float32) * 0.10
    wg = jax.random.normal(ks[4], (KS, KS, NHIDDEN, CN), jnp.float32) * 0.05
    bg = jax.random.normal(ks[5], (CN,), jnp.float32) * 0.05
    wb = jax.random.normal(ks[6], (KS, KS, NHIDDEN, CN), jnp.float32) * 0.05
    bb = jax.random.normal(ks[7], (CN,), jnp.float32) * 0.05
    params = (w1, b1, wg, bg, wb, bb)

    out = jax.block_until_ready(jax.jit(spade_forward)(x, seg, params))
    ref = jax.block_until_ready(spade_reference(x, seg, params))

    assert out.shape == (N, CN, H, W), out.shape
    err = float(jnp.max(jnp.abs(out - ref)))
    assert np.allclose(np.asarray(out), np.asarray(ref), rtol=2e-2, atol=2e-2), \
        f"max abs err = {err}"
    print("KERNEL_OK")
</pallas_src>

<mosaic_0001>
module attributes {stable_mosaic.version = 11 : i64} {
  func.func @_spade_kernel(%arg0: i32, %arg1: memref<1x27x288xf32, #tpu.memory_space<vmem>>, %arg2: memref<1x4x256xf32, #tpu.memory_space<vmem>>, %arg3: memref<1x288xf32, #tpu.memory_space<vmem>>, %arg4: memref<128x27xf32, #tpu.memory_space<vmem>>, %arg5: memref<128x1xf32, #tpu.memory_space<vmem>>, %arg6: memref<72x128xf32, #tpu.memory_space<vmem>>, %arg7: memref<8x1xf32, #tpu.memory_space<vmem>>, %arg8: memref<4x1xf32, #tpu.memory_space<vmem>>, %arg9: memref<4x1xf32, #tpu.memory_space<vmem>>, %arg10: memref<1x4x256xf32, #tpu.memory_space<vmem>>, %arg11: memref<128x326xf32, #tpu.memory_space<vmem>>) attributes {dimension_semantics = [#tpu.dimension_semantics<parallel>], iteration_bounds = array<i64: 2>, scalar_prefetch = 0 : i64, scratch_operands = 1 : i64, tpu.core_type = #tpu.core_type<tc>, window_params = [{transform_indices = @transform_0, window_bounds = array<i64: 1, 27, 288>}, {transform_indices = @transform_1, window_bounds = array<i64: 1, 4, 256>}, {pipeline_mode = #tpu.pipeline_mode<synchronous>, transform_indices = @transform_2, window_bounds = array<i64: 1, 288>}, {pipeline_mode = #tpu.pipeline_mode<synchronous>, transform_indices = @transform_3, window_bounds = array<i64: 128, 27>}, {pipeline_mode = #tpu.pipeline_mode<synchronous>, transform_indices = @transform_4, window_bounds = array<i64: 128, 1>}, {pipeline_mode = #tpu.pipeline_mode<synchronous>, transform_indices = @transform_5, window_bounds = array<i64: 72, 128>}, {pipeline_mode = #tpu.pipeline_mode<synchronous>, transform_indices = @transform_6, window_bounds = array<i64: 8, 1>}, {pipeline_mode = #tpu.pipeline_mode<synchronous>, transform_indices = @transform_7, window_bounds = array<i64: 4, 1>}, {pipeline_mode = #tpu.pipeline_mode<synchronous>, transform_indices = @transform_8, window_bounds = array<i64: 4, 1>}, {transform_indices = @transform_9, window_bounds = array<i64: 1, 4, 256>}]} {
    %cst = arith.constant 0.000000e+00 : f32
    %0 = vector.broadcast %cst : f32 to vector<128x19xf32>
    %c0 = arith.constant 0 : index
    %c0_0 = arith.constant 0 : index
    %1 = vector.load %arg11[%c0, %c0_0] : memref<128x326xf32, #tpu.memory_space<vmem>>, vector<128x19xf32>
    tpu.vector_store %arg11[%c0, %c0_0], %0 {strides = array<i32>} : memref<128x326xf32, #tpu.memory_space<vmem>>, vector<128x19xf32>,
    %cst_1 = arith.constant 0.000000e+00 : f32
    %2 = vector.broadcast %cst_1 : f32 to vector<128x19xf32>
    %c0_2 = arith.constant 0 : index
    %c307 = arith.constant 307 : index
    %3 = vector.load %arg11[%c0_2, %c307] : memref<128x326xf32, #tpu.memory_space<vmem>>, vector<128x19xf32>
    tpu.vector_store %arg11[%c0_2, %c307], %2 {strides = array<i32>} : memref<128x326xf32, #tpu.memory_space<vmem>>, vector<128x19xf32>,
    %c0_3 = arith.constant 0 : index
    %c0_4 = arith.constant 0 : index
    %4 = vector.load %arg4[%c0_3, %c0_4] : memref<128x27xf32, #tpu.memory_space<vmem>>, vector<128x27xf32>
    %c0_5 = arith.constant 0 : index
    %c0_6 = arith.constant 0 : index
    %5 = vector.load %arg5[%c0_5, %c0_6] : memref<128x1xf32, #tpu.memory_space<vmem>>, vector<128x1xf32>
    %c0_7 = arith.constant 0 : index
    %c0_8 = arith.constant 0 : index
    %c0_9 = arith.constant 0 : index
    %6 = vector.load %arg1[%c0_7, %c0_8, %c0_9] : memref<1x27x288xf32, #tpu.memory_space<vmem>>, vector<1x27x256xf32>
    %7 = vector.shape_cast %6 : vector<1x27x256xf32> to vector<27x256xf32>
    %cst_10 = arith.constant dense<0.000000e+00> : vector<128x256xf32>
    %8 = tpu.matmul %4, %7, %cst_10 {dimension_numbers = #tpu.dot_dimension_numbers<[1], [0], [0], [1], [0, 0, 1, 1], [], []>} : vector<128x27xf32>, vector<27x256xf32>, vector<128x256xf32> -> vector<128x256xf32>
    %9 = vector.broadcast %5 : vector<128x1xf32> to vector<128x256xf32>
    %10 = arith.addf %8, %9 : vector<128x256xf32>
    %cst_11 = arith.constant 0.000000e+00 : f32
    %11 = vector.broadcast %cst_11 : f32 to vector<128x256xf32>
    %12 = arith.maximumf %10, %11 : vector<128x256xf32>
    %c0_12 = arith.constant 0 : index
    %c0_13 = arith.constant 0 : index
    %13 = vector.load %arg3[%c0_12, %c0_13] : memref<1x288xf32, #tpu.memory_space<vmem>>, vector<1x256xf32>
    %14 = vector.broadcast %13 : vector<1x256xf32> to vector<128x256xf32>
    %15 = arith.mulf %12, %14 : vector<128x256xf32>
    %c0_14 = arith.constant 0 : index
    %c19 = arith.constant 19 : index
    %16 = vector.load %arg11[%c0_14, %c19] : memref<128x326xf32, #tpu.memory_space<vmem>>, vector<128x256xf32>
    tpu.vector_store %arg11[%c0_14, %c19], %15 {strides = array<i32>} : memref<128x326xf32, #tpu.memory_space<vmem>>, vector<128x256xf32>,
    %c0_15 = arith.constant 0 : index
    %c0_16 = arith.constant 0 : index
    %c256 = arith.constant 256 : index
    %17 = vector.load %arg1[%c0_15, %c0_16, %c256] : memref<1x27x288xf32, #tpu.memory_space<vmem>>, vector<1x27x32xf32>
    %18 = vector.shape_cast %17 : vector<1x27x32xf32> to vector<27x32xf32>
    %cst_17 = arith.constant dense<0.000000e+00> : vector<128x32xf32>
    %19 = tpu.matmul %4, %18, %cst_17 {dimension_numbers = #tpu.dot_dimension_numbers<[1], [0], [0], [1], [0, 0, 1, 1], [], []>} : vector<128x27xf32>, vector<27x32xf32>, vector<128x32xf32> -> vector<128x32xf32>
    %20 = vector.broadcast %5 : vector<128x1xf32> to vector<128x32xf32>
    %21 = arith.addf %19, %20 : vector<128x32xf32>
    %cst_18 = arith.constant 0.000000e+00 : f32
    %22 = vector.broadcast %cst_18 : f32 to vector<128x32xf32>
    %23 = arith.maximumf %21, %22 : vector<128x32xf32>
    %c0_19 = arith.constant 0 : index
    %c256_20 = arith.constant 256 : index
    %24 = vector.load %arg3[%c0_19, %c256_20] : memref<1x288xf32, #tpu.memory_space<vmem>>, vector<1x32xf32>
    %25 = vector.broadcast %24 : vector<1x32xf32> to vector<128x32xf32>
    %26 = arith.mulf %23, %25 : vector<128x32xf32>
    %c0_21 = arith.constant 0 : index
    %c275 = arith.constant 275 : index
    %27 = vector.load %arg11[%c0_21, %c275] : memref<128x326xf32, #tpu.memory_space<vmem>>, vector<128x32xf32>
    tpu.vector_store %arg11[%c0_21, %c275], %26 {strides = array<i32>} : memref<128x326xf32, #tpu.memory_space<vmem>>, vector<128x32xf32>,
    %c0_22 = arith.constant 0 : index
    %c0_23 = arith.constant 0 : index
    %28 = vector.load %arg6[%c0_22, %c0_23] : memref<72x128xf32, #tpu.memory_space<vmem>>, vector<72x128xf32>
    %c0_24 = arith.constant 0 : index
    %c0_25 = arith.constant 0 : index
    %29 = vector.load %arg7[%c0_24, %c0_25] : memref<8x1xf32, #tpu.memory_space<vmem>>, vector<8x1xf32>
    %c0_26 = arith.constant 0 : index
    %c0_27 = arith.constant 0 : index
    %30 = vector.load %arg8[%c0_26, %c0_27] : memref<4x1xf32, #tpu.memory_space<vmem>>, vector<4x1xf32>
    %c0_28 = arith.constant 0 : index
    %c0_29 = arith.constant 0 : index
    %31 = vector.load %arg9[%c0_28, %c0_29] : memref<4x1xf32, #tpu.memory_space<vmem>>, vector<4x1xf32>
    %c0_30 = arith.constant 0 : index
    %c0_31 = arith.constant 0 : index
    %32 = vector.load %arg11[%c0_30, %c0_31] : memref<128x326xf32, #tpu.memory_space<vmem>>, vector<128x326xf32>
    %cst_32 = arith.constant dense<0.000000e+00> : vector<72x326xf32>
    %33 = tpu.matmul %28, %32, %cst_32 {dimension_numbers = #tpu.dot_dimension_numbers<[1], [0], [0], [1], [0, 0, 1, 1], [], []>} : vector<72x128xf32>, vector<128x326xf32>, vector<72x326xf32> -> vector<72x326xf32>
    %34 = vector.extract_strided_slice %33 {offsets = [0, 0], sizes = [8, 288], strides = [1, 1]} : vector<72x326xf32> to vector<8x288xf32>
    %35 = vector.broadcast %29 : vector<8x1xf32> to vector<8x288xf32>
    %36 = arith.addf %35, %34 : vector<8x288xf32>
    %37 = vector.extract_strided_slice %33 {offsets = [8, 1], sizes = [8, 288], strides = [1, 1]} : vector<72x326xf32> to vector<8x288xf32>
    %38 = arith.addf %36, %37 : vector<8x288xf32>
    %39 = vector.extract_strided_slice %33 {offsets = [16, 2], sizes = [8, 288], strides = [1, 1]} : vector<72x326xf32> to vector<8x288xf32>
    %40 = arith.addf %38, %39 : vector<8x288xf32>
    %41 = vector.extract_strided_slice %33 {offsets = [24, 18], sizes = [8, 288], strides = [1, 1]} : vector<72x326xf32> to vector<8x288xf32>
    %42 = arith.addf %40, %41 : vector<8x288xf32>
    %43 = vector.extract_strided_slice %33 {offsets = [32, 19], sizes = [8, 288], strides = [1, 1]} : vector<72x326xf32> to vector<8x288xf32>
    %44 = arith.addf %42, %43 : vector<8x288xf32>
    %45 = vector.extract_strided_slice %33 {offsets = [40, 20], sizes = [8, 288], strides = [1, 1]} : vector<72x326xf32> to vector<8x288xf32>
    %46 = arith.addf %44, %45 : vector<8x288xf32>
    %47 = vector.extract_strided_slice %33 {offsets = [48, 36], sizes = [8, 288], strides = [1, 1]} : vector<72x326xf32> to vector<8x288xf32>
    %48 = arith.addf %46, %47 : vector<8x288xf32>
    %49 = vector.extract_strided_slice %33 {offsets = [56, 37], sizes = [8, 288], strides = [1, 1]} : vector<72x326xf32> to vector<8x288xf32>
    %50 = arith.addf %48, %49 : vector<8x288xf32>
    %51 = vector.extract_strided_slice %33 {offsets = [64, 38], sizes = [8, 288], strides = [1, 1]} : vector<72x326xf32> to vector<8x288xf32>
    %52 = arith.addf %50, %51 : vector<8x288xf32>
    %53 = vector.extract_strided_slice %52 {offsets = [0, 0], sizes = [4, 288], strides = [1, 1]} : vector<8x288xf32> to vector<4x288xf32>
    %54 = vector.extract_strided_slice %52 {offsets = [4, 0], sizes = [4, 288], strides = [1, 1]} : vector<8x288xf32> to vector<4x288xf32>
    %c0_33 = arith.constant 0 : index
    %c0_34 = arith.constant 0 : index
    %c0_35 = arith.constant 0 : index
    %55 = vector.load %arg2[%c0_33, %c0_34, %c0_35] : memref<1x4x256xf32, #tpu.memory_space<vmem>>, vector<1x4x16xf32>
    %56 = vector.shape_cast %55 : vector<1x4x16xf32> to vector<4x16xf32>
    %57 = vector.broadcast %30 : vector<4x1xf32> to vector<4x16xf32>
    %58 = arith.subf %56, %57 : vector<4x16xf32>
    %59 = vector.broadcast %31 : vector<4x1xf32> to vector<4x16xf32>
    %60 = arith.mulf %58, %59 : vector<4x16xf32>
    %61 = vector.extract_strided_slice %53 {offsets = [0, 0], sizes = [4, 16], strides = [1, 1]} : vector<4x288xf32> to vector<4x16xf32>
    %cst_36 = arith.constant 1.000000e+00 : f32
    %62 = vector.broadcast %cst_36 : f32 to vector<4x16xf32>
    %63 = arith.addf %62, %61 : vector<4x16xf32>
    %64 = arith.mulf %60, %63 : vector<4x16xf32>
    %65 = vector.extract_strided_slice %54 {offsets = [0, 0], sizes = [4, 16], strides = [1, 1]} : vector<4x288xf32> to vector<4x16xf32>
    %66 = arith.addf %64, %65 : vector<4x16xf32>
    %c0_37 = arith.constant 0 : index
    %c0_38 = arith.constant 0 : index
    %c0_39 = arith.constant 0 : index
    %67 = vector.load %arg10[%c0_37, %c0_38, %c0_39] : memref<1x4x256xf32, #tpu.memory_space<vmem>>, vector<1x4x16xf32>
    %68 = vector.shape_cast %67 : vector<1x4x16xf32> to vector<4x16xf32>
    %69 = vector.shape_cast %66 : vector<4x16xf32> to vector<1x4x16xf32>
    tpu.vector_store %arg10[%c0_37, %c0_38, %c0_39], %69 {strides = array<i32>} : memref<1x4x256xf32, #tpu.memory_space<vmem>>, vector<1x4x16xf32>,
    %c0_40 = arith.constant 0 : index
    %c0_41 = arith.constant 0 : index
    %c16 = arith.constant 16 : index
    %70 = vector.load %arg2[%c0_40, %c0_41, %c16] : memref<1x4x256xf32, #tpu.memory_space<vmem>>, vector<1x4x16xf32>
    %71 = vector.shape_cast %70 : vector<1x4x16xf32> to vector<4x16xf32>
    %72 = vector.broadcast %30 : vector<4x1xf32> to vector<4x16xf32>
    %73 = arith.subf %71, %72 : vector<4x16xf32>
    %74 = vector.broadcast %31 : vector<4x1xf32> to vector<4x16xf32>
    %75 = arith.mulf %73, %74 : vector<4x16xf32>
    %76 = vector.extract_strided_slice %53 {offsets = [0, 18], sizes = [4, 16], strides = [1, 1]} : vector<4x288xf32> to vector<4x16xf32>
    %cst_42 = arith.constant 1.000000e+00 : f32
    %77 = vector.broadcast %cst_42 : f32 to vector<4x16xf32>
    %78 = arith.addf %77, %76 : vector<4x16xf32>
    %79 = arith.mulf %75, %78 : vector<4x16xf32>
    %80 = vector.extract_strided_slice %54 {offsets = [0, 18], sizes = [4, 16], strides = [1, 1]} : vector<4x288xf32> to vector<4x16xf32>
    %81 = arith.addf %79, %80 : vector<4x16xf32>
    %c0_43 = arith.constant 0 : index
    %c0_44 = arith.constant 0 : index
    %c16_45 = arith.constant 16 : index
    %82 = vector.load %arg10[%c0_43, %c0_44, %c16_45] : memref<1x4x256xf32, #tpu.memory_space<vmem>>, vector<1x4x16xf32>
    %83 = vector.shape_cast %82 : vector<1x4x16xf32> to vector<4x16xf32>
    %84 = vector.shape_cast %81 : vector<4x16xf32> to vector<1x4x16xf32>
    tpu.vector_store %arg10[%c0_43, %c0_44, %c16_45], %84 {strides = array<i32>} : memref<1x4x256xf32, #tpu.memory_space<vmem>>, vector<1x4x16xf32>,
    %c0_46 = arith.constant 0 : index
    %c0_47 = arith.constant 0 : index
    %c32 = arith.constant 32 : index
    %85 = vector.load %arg2[%c0_46, %c0_47, %c32] : memref<1x4x256xf32, #tpu.memory_space<vmem>>, vector<1x4x16xf32>
    %86 = vector.shape_cast %85 : vector<1x4x16xf32> to vector<4x16xf32>
    %87 = vector.broadcast %30 : vector<4x1xf32> to vector<4x16xf32>
    %88 = arith.subf %86, %87 : vector<4x16xf32>
    %89 = vector.broadcast %31 : vector<4x1xf32> to vector<4x16xf32>
    %90 = arith.mulf %88, %89 : vector<4x16xf32>
    %91 = vector.extract_strided_slice %53 {offsets = [0, 36], sizes = [4, 16], strides = [1, 1]} : vector<4x288xf32> to vector<4x16xf32>
    %cst_48 = arith.constant 1.000000e+00 : f32
    %92 = vector.broadcast %cst_48 : f32 to vector<4x16xf32>
    %93 = arith.addf %92, %91 : vector<4x16xf32>
    %94 = arith.mulf %90, %93 : vector<4x16xf32>
    %95 = vector.extract_strided_slice %54 {offsets = [0, 36], sizes = [4, 16], strides = [1, 1]} : vector<4x288xf32> to vector<4x16xf32>
    %96 = arith.addf %94, %95 : vector<4x16xf32>
    %c0_49 = arith.constant 0 : index
    %c0_50 = arith.constant 0 : index
    %c32_51 = arith.constant 32 : index
    %97 = vector.load %arg10[%c0_49, %c0_50, %c32_51] : memref<1x4x256xf32, #tpu.memory_space<vmem>>, vector<1x4x16xf32>
    %98 = vector.shape_cast %97 : vector<1x4x16xf32> to vector<4x16xf32>
    %99 = vector.shape_cast %96 : vector<4x16xf32> to vector<1x4x16xf32>
    tpu.vector_store %arg10[%c0_49, %c0_50, %c32_51], %99 {strides = array<i32>} : memref<1x4x256xf32, #tpu.memory_space<vmem>>, vector<1x4x16xf32>,
    %c0_52 = arith.constant 0 : index
    %c0_53 = arith.constant 0 : index
    %c48 = arith.constant 48 : index
    %100 = vector.load %arg2[%c0_52, %c0_53, %c48] : memref<1x4x256xf32, #tpu.memory_space<vmem>>, vector<1x4x16xf32>
    %101 = vector.shape_cast %100 : vector<1x4x16xf32> to vector<4x16xf32>
    %102 = vector.broadcast %30 : vector<4x1xf32> to vector<4x16xf32>
    %103 = arith.subf %101, %102 : vector<4x16xf32>
    %104 = vector.broadcast %31 : vector<4x1xf32> to vector<4x16xf32>
    %105 = arith.mulf %103, %104 : vector<4x16xf32>
    %106 = vector.extract_strided_slice %53 {offsets = [0, 54], sizes = [4, 16], strides = [1, 1]} : vector<4x288xf32> to vector<4x16xf32>
    %cst_54 = arith.constant 1.000000e+00 : f32
    %107 = vector.broadcast %cst_54 : f32 to vector<4x16xf32>
    %108 = arith.addf %107, %106 : vector<4x16xf32>
    %109 = arith.mulf %105, %108 : vector<4x16xf32>
    %110 = vector.extract_strided_slice %54 {offsets = [0, 54], sizes = [4, 16], strides = [1, 1]} : vector<4x288xf32> to vector<4x16xf32>
    %111 = arith.addf %109, %110 : vector<4x16xf32>
    %c0_55 = arith.constant 0 : index
    %c0_56 = arith.constant 0 : index
    %c48_57 = arith.constant 48 : index
    %112 = vector.load %arg10[%c0_55, %c0_56, %c48_57] : memref<1x4x256xf32, #tpu.memory_space<vmem>>, vector<1x4x16xf32>
    %113 = vector.shape_cast %112 : vector<1x4x16xf32> to vector<4x16xf32>
    %114 = vector.shape_cast %111 : vector<4x16xf32> to vector<1x4x16xf32>
    tpu.vector_store %arg10[%c0_55, %c0_56, %c48_57], %114 {strides = array<i32>} : memref<1x4x256xf32, #tpu.memory_space<vmem>>, vector<1x4x16xf32>,
    %c0_58 = arith.constant 0 : index
    %c0_59 = arith.constant 0 : index
    %c64 = arith.constant 64 : index
    %115 = vector.load %arg2[%c0_58, %c0_59, %c64] : memref<1x4x256xf32, #tpu.memory_space<vmem>>, vector<1x4x16xf32>
    %116 = vector.shape_cast %115 : vector<1x4x16xf32> to vector<4x16xf32>
    %117 = vector.broadcast %30 : vector<4x1xf32> to vector<4x16xf32>
    %118 = arith.subf %116, %117 : vector<4x16xf32>
    %119 = vector.broadcast %31 : vector<4x1xf32> to vector<4x16xf32>
    %120 = arith.mulf %118, %119 : vector<4x16xf32>
    %121 = vector.extract_strided_slice %53 {offsets = [0, 72], sizes = [4, 16], strides = [1, 1]} : vector<4x288xf32> to vector<4x16xf32>
    %cst_60 = arith.constant 1.000000e+00 : f32
    %122 = vector.broadcast %cst_60 : f32 to vector<4x16xf32>
    %123 = arith.addf %122, %121 : vector<4x16xf32>
    %124 = arith.mulf %120, %123 : vector<4x16xf32>
    %125 = vector.extract_strided_slice %54 {offsets = [0, 72], sizes = [4, 16], strides = [1, 1]} : vector<4x288xf32> to vector<4x16xf32>
    %126 = arith.addf %124, %125 : vector<4x16xf32>
    %c0_61 = arith.constant 0 : index
    %c0_62 = arith.constant 0 : index
    %c64_63 = arith.constant 64 : index
    %127 = vector.load %arg10[%c0_61, %c0_62, %c64_63] : memref<1x4x256xf32, #tpu.memory_space<vmem>>, vector<1x4x16xf32>
    %128 = vector.shape_cast %127 : vector<1x4x16xf32> to vector<4x16xf32>
    %129 = vector.shape_cast %126 : vector<4x16xf32> to vector<1x4x16xf32>
    tpu.vector_store %arg10[%c0_61, %c0_62, %c64_63], %129 {strides = array<i32>} : memref<1x4x256xf32, #tpu.memory_space<vmem>>, vector<1x4x16xf32>,
    %c0_64 = arith.constant 0 : index
    %c0_65 = arith.constant 0 : index
    %c80 = arith.constant 80 : index
    %130 = vector.load %arg2[%c0_64, %c0_65, %c80] : memref<1x4x256xf32, #tpu.memory_space<vmem>>, vector<1x4x16xf32>
    %131 = vector.shape_cast %130 : vector<1x4x16xf32> to vector<4x16xf32>
    %132 = vector.broadcast %30 : vector<4x1xf32> to vector<4x16xf32>
    %133 = arith.subf %131, %132 : vector<4x16xf32>
    %134 = vector.broadcast %31 : vector<4x1xf32> to vector<4x16xf32>
    %135 = arith.mulf %133, %134 : vector<4x16xf32>
    %136 = vector.extract_strided_slice %53 {offsets = [0, 90], sizes = [4, 16], strides = [1, 1]} : vector<4x288xf32> to vector<4x16xf32>
    %cst_66 = arith.constant 1.000000e+00 : f32
    %137 = vector.broadcast %cst_66 : f32 to vector<4x16xf32>
    %138 = arith.addf %137, %136 : vector<4x16xf32>
    %139 = arith.mulf %135, %138 : vector<4x16xf32>
    %140 = vector.extract_strided_slice %54 {offsets = [0, 90], sizes = [4, 16], strides = [1, 1]} : vector<4x288xf32> to vector<4x16xf32>
    %141 = arith.addf %139, %140 : vector<4x16xf32>
    %c0_67 = arith.constant 0 : index
    %c0_68 = arith.constant 0 : index
    %c80_69 = arith.constant 80 : index
    %142 = vector.load %arg10[%c0_67, %c0_68, %c80_69] : memref<1x4x256xf32, #tpu.memory_space<vmem>>, vector<1x4x16xf32>
    %143 = vector.shape_cast %142 : vector<1x4x16xf32> to vector<4x16xf32>
    %144 = vector.shape_cast %141 : vector<4x16xf32> to vector<1x4x16xf32>
    tpu.vector_store %arg10[%c0_67, %c0_68, %c80_69], %144 {strides = array<i32>} : memref<1x4x256xf32, #tpu.memory_space<vmem>>, vector<1x4x16xf32>,
    %c0_70 = arith.constant 0 : index
    %c0_71 = arith.constant 0 : index
    %c96 = arith.constant 96 : index
    %145 = vector.load %arg2[%c0_70, %c0_71, %c96] : memref<1x4x256xf32, #tpu.memory_space<vmem>>, vector<1x4x16xf32>
    %146 = vector.shape_cast %145 : vector<1x4x16xf32> to vector<4x16xf32>
    %147 = vector.broadcast %30 : vector<4x1xf32> to vector<4x16xf32>
    %148 = arith.subf %146, %147 : vector<4x16xf32>
    %149 = vector.broadcast %31 : vector<4x1xf32> to vector<4x16xf32>
    %150 = arith.mulf %148, %149 : vector<4x16xf32>
    %151 = vector.extract_strided_slice %53 {offsets = [0, 108], sizes = [4, 16], strides = [1, 1]} : vector<4x288xf32> to vector<4x16xf32>
    %cst_72 = arith.constant 1.000000e+00 : f32
    %152 = vector.broadcast %cst_72 : f32 to vector<4x16xf32>
    %153 = arith.addf %152, %151 : vector<4x16xf32>
    %154 = arith.mulf %150, %153 : vector<4x16xf32>
    %155 = vector.extract_strided_slice %54 {offsets = [0, 108], sizes = [4, 16], strides = [1, 1]} : vector<4x288xf32> to vector<4x16xf32>
    %156 = arith.addf %154, %155 : vector<4x16xf32>
    %c0_73 = arith.constant 0 : index
    %c0_74 = arith.constant 0 : index
    %c96_75 = arith.constant 96 : index
    %157 = vector.load %arg10[%c0_73, %c0_74, %c96_75] : memref<1x4x256xf32, #tpu.memory_space<vmem>>, vector<1x4x16xf32>
    %158 = vector.shape_cast %157 : vector<1x4x16xf32> to vector<4x16xf32>
    %159 = vector.shape_cast %156 : vector<4x16xf32> to vector<1x4x16xf32>
    tpu.vector_store %arg10[%c0_73, %c0_74, %c96_75], %159 {strides = array<i32>} : memref<1x4x256xf32, #tpu.memory_space<vmem>>, vector<1x4x16xf32>,
    %c0_76 = arith.constant 0 : index
    %c0_77 = arith.constant 0 : index
    %c112 = arith.constant 112 : index
    %160 = vector.load %arg2[%c0_76, %c0_77, %c112] : memref<1x4x256xf32, #tpu.memory_space<vmem>>, vector<1x4x16xf32>
    %161 = vector.shape_cast %160 : vector<1x4x16xf32> to vector<4x16xf32>
    %162 = vector.broadcast %30 : vector<4x1xf32> to vector<4x16xf32>
    %163 = arith.subf %161, %162 : vector<4x16xf32>
    %164 = vector.broadcast %31 : vector<4x1xf32> to vector<4x16xf32>
    %165 = arith.mulf %163, %164 : vector<4x16xf32>
    %166 = vector.extract_strided_slice %53 {offsets = [0, 126], sizes = [4, 16], strides = [1, 1]} : vector<4x288xf32> to vector<4x16xf32>
    %cst_78 = arith.constant 1.000000e+00 : f32
    %167 = vector.broadcast %cst_78 : f32 to vector<4x16xf32>
    %168 = arith.addf %167, %166 : vector<4x16xf32>
    %169 = arith.mulf %165, %168 : vector<4x16xf32>
    %170 = vector.extract_strided_slice %54 {offsets = [0, 126], sizes = [4, 16], strides = [1, 1]} : vector<4x288xf32> to vector<4x16xf32>
    %171 = arith.addf %169, %170 : vector<4x16xf32>
    %c0_79 = arith.constant 0 : index
    %c0_80 = arith.constant 0 : index
    %c112_81 = arith.constant 112 : index
    %172 = vector.load %arg10[%c0_79, %c0_80, %c112_81] : memref<1x4x256xf32, #tpu.memory_space<vmem>>, vector<1x4x16xf32>
    %173 = vector.shape_cast %172 : vector<1x4x16xf32> to vector<4x16xf32>
    %174 = vector.shape_cast %171 : vector<4x16xf32> to vector<1x4x16xf32>
    tpu.vector_store %arg10[%c0_79, %c0_80, %c112_81], %174 {strides = array<i32>} : memref<1x4x256xf32, #tpu.memory_space<vmem>>, vector<1x4x16xf32>,
    %c0_82 = arith.constant 0 : index
    %c0_83 = arith.constant 0 : index
    %c128 = arith.constant 128 : index
    %175 = vector.load %arg2[%c0_82, %c0_83, %c128] : memref<1x4x256xf32, #tpu.memory_space<vmem>>, vector<1x4x16xf32>
    %176 = vector.shape_cast %175 : vector<1x4x16xf32> to vector<4x16xf32>
    %177 = vector.broadcast %30 : vector<4x1xf32> to vector<4x16xf32>
    %178 = arith.subf %176, %177 : vector<4x16xf32>
    %179 = vector.broadcast %31 : vector<4x1xf32> to vector<4x16xf32>
    %180 = arith.mulf %178, %179 : vector<4x16xf32>
    %181 = vector.extract_strided_slice %53 {offsets = [0, 144], sizes = [4, 16], strides = [1, 1]} : vector<4x288xf32> to vector<4x16xf32>
    %cst_84 = arith.constant 1.000000e+00 : f32
    %182 = vector.broadcast %cst_84 : f32 to vector<4x16xf32>
    %183 = arith.addf %182, %181 : vector<4x16xf32>
    %184 = arith.mulf %180, %183 : vector<4x16xf32>
    %185 = vector.extract_strided_slice %54 {offsets = [0, 144], sizes = [4, 16], strides = [1, 1]} : vector<4x288xf32> to vector<4x16xf32>
    %186 = arith.addf %184, %185 : vector<4x16xf32>
    %c0_85 = arith.constant 0 : index
    %c0_86 = arith.constant 0 : index
    %c128_87 = arith.constant 128 : index
    %187 = vector.load %arg10[%c0_85, %c0_86, %c128_87] : memref<1x4x256xf32, #tpu.memory_space<vmem>>, vector<1x4x16xf32>
    %188 = vector.shape_cast %187 : vector<1x4x16xf32> to vector<4x16xf32>
    %189 = vector.shape_cast %186 : vector<4x16xf32> to vector<1x4x16xf32>
    tpu.vector_store %arg10[%c0_85, %c0_86, %c128_87], %189 {strides = array<i32>} : memref<1x4x256xf32, #tpu.memory_space<vmem>>, vector<1x4x16xf32>,
    %c0_88 = arith.constant 0 : index
    %c0_89 = arith.constant 0 : index
    %c144 = arith.constant 144 : index
    %190 = vector.load %arg2[%c0_88, %c0_89, %c144] : memref<1x4x256xf32, #tpu.memory_space<vmem>>, vector<1x4x16xf32>
    %191 = vector.shape_cast %190 : vector<1x4x16xf32> to vector<4x16xf32>
    %192 = vector.broadcast %30 : vector<4x1xf32> to vector<4x16xf32>
    %193 = arith.subf %191, %192 : vector<4x16xf32>
    %194 = vector.broadcast %31 : vector<4x1xf32> to vector<4x16xf32>
    %195 = arith.mulf %193, %194 : vector<4x16xf32>
    %196 = vector.extract_strided_slice %53 {offsets = [0, 162], sizes = [4, 16], strides = [1, 1]} : vector<4x288xf32> to vector<4x16xf32>
    %cst_90 = arith.constant 1.000000e+00 : f32
    %197 = vector.broadcast %cst_90 : f32 to vector<4x16xf32>
    %198 = arith.addf %197, %196 : vector<4x16xf32>
    %199 = arith.mulf %195, %198 : vector<4x16xf32>
    %200 = vector.extract_strided_slice %54 {offsets = [0, 162], sizes = [4, 16], strides = [1, 1]} : vector<4x288xf32> to vector<4x16xf32>
    %201 = arith.addf %199, %200 : vector<4x16xf32>
    %c0_91 = arith.constant 0 : index
    %c0_92 = arith.constant 0 : index
    %c144_93 = arith.constant 144 : index
    %202 = vector.load %arg10[%c0_91, %c0_92, %c144_93] : memref<1x4x256xf32, #tpu.memory_space<vmem>>, vector<1x4x16xf32>
    %203 = vector.shape_cast %202 : vector<1x4x16xf32> to vector<4x16xf32>
    %204 = vector.shape_cast %201 : vector<4x16xf32> to vector<1x4x16xf32>
    tpu.vector_store %arg10[%c0_91, %c0_92, %c144_93], %204 {strides = array<i32>} : memref<1x4x256xf32, #tpu.memory_space<vmem>>, vector<1x4x16xf32>,
    %c0_94 = arith.constant 0 : index
    %c0_95 = arith.constant 0 : index
    %c160 = arith.constant 160 : index
    %205 = vector.load %arg2[%c0_94, %c0_95, %c160] : memref<1x4x256xf32, #tpu.memory_space<vmem>>, vector<1x4x16xf32>
    %206 = vector.shape_cast %205 : vector<1x4x16xf32> to vector<4x16xf32>
    %207 = vector.broadcast %30 : vector<4x1xf32> to vector<4x16xf32>
    %208 = arith.subf %206, %207 : vector<4x16xf32>
    %209 = vector.broadcast %31 : vector<4x1xf32> to vector<4x16xf32>
    %210 = arith.mulf %208, %209 : vector<4x16xf32>
    %211 = vector.extract_strided_slice %53 {offsets = [0, 180], sizes = [4, 16], strides = [1, 1]} : vector<4x288xf32> to vector<4x16xf32>
    %cst_96 = arith.constant 1.000000e+00 : f32
    %212 = vector.broadcast %cst_96 : f32 to vector<4x16xf32>
    %213 = arith.addf %212, %211 : vector<4x16xf32>
    %214 = arith.mulf %210, %213 : vector<4x16xf32>
    %215 = vector.extract_strided_slice %54 {offsets = [0, 180], sizes = [4, 16], strides = [1, 1]} : vector<4x288xf32> to vector<4x16xf32>
    %216 = arith.addf %214, %215 : vector<4x16xf32>
    %c0_97 = arith.constant 0 : index
    %c0_98 = arith.constant 0 : index
    %c160_99 = arith.constant 160 : index
    %217 = vector.load %arg10[%c0_97, %c0_98, %c160_99] : memref<1x4x256xf32, #tpu.memory_space<vmem>>, vector<1x4x16xf32>
    %218 = vector.shape_cast %217 : vector<1x4x16xf32> to vector<4x16xf32>
    %219 = vector.shape_cast %216 : vector<4x16xf32> to vector<1x4x16xf32>
    tpu.vector_store %arg10[%c0_97, %c0_98, %c160_99], %219 {strides = array<i32>} : memref<1x4x256xf32, #tpu.memory_space<vmem>>, vector<1x4x16xf32>,
    %c0_100 = arith.constant 0 : index
    %c0_101 = arith.constant 0 : index
    %c176 = arith.constant 176 : index
    %220 = vector.load %arg2[%c0_100, %c0_101, %c176] : memref<1x4x256xf32, #tpu.memory_space<vmem>>, vector<1x4x16xf32>
    %221 = vector.shape_cast %220 : vector<1x4x16xf32> to vector<4x16xf32>
    %222 = vector.broadcast %30 : vector<4x1xf32> to vector<4x16xf32>
    %223 = arith.subf %221, %222 : vector<4x16xf32>
    %224 = vector.broadcast %31 : vector<4x1xf32> to vector<4x16xf32>
    %225 = arith.mulf %223, %224 : vector<4x16xf32>
    %226 = vector.extract_strided_slice %53 {offsets = [0, 198], sizes = [4, 16], strides = [1, 1]} : vector<4x288xf32> to vector<4x16xf32>
    %cst_102 = arith.constant 1.000000e+00 : f32
    %227 = vector.broadcast %cst_102 : f32 to vector<4x16xf32>
    %228 = arith.addf %227, %226 : vector<4x16xf32>
    %229 = arith.mulf %225, %228 : vector<4x16xf32>
    %230 = vector.extract_strided_slice %54 {offsets = [0, 198], sizes = [4, 16], strides = [1, 1]} : vector<4x288xf32> to vector<4x16xf32>
    %231 = arith.addf %229, %230 : vector<4x16xf32>
    %c0_103 = arith.constant 0 : index
    %c0_104 = arith.constant 0 : index
    %c176_105 = arith.constant 176 : index
    %232 = vector.load %arg10[%c0_103, %c0_104, %c176_105] : memref<1x4x256xf32, #tpu.memory_space<vmem>>, vector<1x4x16xf32>
    %233 = vector.shape_cast %232 : vector<1x4x16xf32> to vector<4x16xf32>
    %234 = vector.shape_cast %231 : vector<4x16xf32> to vector<1x4x16xf32>
    tpu.vector_store %arg10[%c0_103, %c0_104, %c176_105], %234 {strides = array<i32>} : memref<1x4x256xf32, #tpu.memory_space<vmem>>, vector<1x4x16xf32>,
    %c0_106 = arith.constant 0 : index
    %c0_107 = arith.constant 0 : index
    %c192 = arith.constant 192 : index
    %235 = vector.load %arg2[%c0_106, %c0_107, %c192] : memref<1x4x256xf32, #tpu.memory_space<vmem>>, vector<1x4x16xf32>
    %236 = vector.shape_cast %235 : vector<1x4x16xf32> to vector<4x16xf32>
    %237 = vector.broadcast %30 : vector<4x1xf32> to vector<4x16xf32>
    %238 = arith.subf %236, %237 : vector<4x16xf32>
    %239 = vector.broadcast %31 : vector<4x1xf32> to vector<4x16xf32>
    %240 = arith.mulf %238, %239 : vector<4x16xf32>
    %241 = vector.extract_strided_slice %53 {offsets = [0, 216], sizes = [4, 16], strides = [1, 1]} : vector<4x288xf32> to vector<4x16xf32>
    %cst_108 = arith.constant 1.000000e+00 : f32
    %242 = vector.broadcast %cst_108 : f32 to vector<4x16xf32>
    %243 = arith.addf %242, %241 : vector<4x16xf32>
    %244 = arith.mulf %240, %243 : vector<4x16xf32>
    %245 = vector.extract_strided_slice %54 {offsets = [0, 216], sizes = [4, 16], strides = [1, 1]} : vector<4x288xf32> to vector<4x16xf32>
    %246 = arith.addf %244, %245 : vector<4x16xf32>
    %c0_109 = arith.constant 0 : index
    %c0_110 = arith.constant 0 : index
    %c192_111 = arith.constant 192 : index
    %247 = vector.load %arg10[%c0_109, %c0_110, %c192_111] : memref<1x4x256xf32, #tpu.memory_space<vmem>>, vector<1x4x16xf32>
    %248 = vector.shape_cast %247 : vector<1x4x16xf32> to vector<4x16xf32>
    %249 = vector.shape_cast %246 : vector<4x16xf32> to vector<1x4x16xf32>
    tpu.vector_store %arg10[%c0_109, %c0_110, %c192_111], %249 {strides = array<i32>} : memref<1x4x256xf32, #tpu.memory_space<vmem>>, vector<1x4x16xf32>,
    %c0_112 = arith.constant 0 : index
    %c0_113 = arith.constant 0 : index
    %c208 = arith.constant 208 : index
    %250 = vector.load %arg2[%c0_112, %c0_113, %c208] : memref<1x4x256xf32, #tpu.memory_space<vmem>>, vector<1x4x16xf32>
    %251 = vector.shape_cast %250 : vector<1x4x16xf32> to vector<4x16xf32>
    %252 = vector.broadcast %30 : vector<4x1xf32> to vector<4x16xf32>
    %253 = arith.subf %251, %252 : vector<4x16xf32>
    %254 = vector.broadcast %31 : vector<4x1xf32> to vector<4x16xf32>
    %255 = arith.mulf %253, %254 : vector<4x16xf32>
    %256 = vector.extract_strided_slice %53 {offsets = [0, 234], sizes = [4, 16], strides = [1, 1]} : vector<4x288xf32> to vector<4x16xf32>
    %cst_114 = arith.constant 1.000000e+00 : f32
    %257 = vector.broadcast %cst_114 : f32 to vector<4x16xf32>
    %258 = arith.addf %257, %256 : vector<4x16xf32>
    %259 = arith.mulf %255, %258 : vector<4x16xf32>
    %260 = vector.extract_strided_slice %54 {offsets = [0, 234], sizes = [4, 16], strides = [1, 1]} : vector<4x288xf32> to vector<4x16xf32>
    %261 = arith.addf %259, %260 : vector<4x16xf32>
    %c0_115 = arith.constant 0 : index
    %c0_116 = arith.constant 0 : index
    %c208_117 = arith.constant 208 : index
    %262 = vector.load %arg10[%c0_115, %c0_116, %c208_117] : memref<1x4x256xf32, #tpu.memory_space<vmem>>, vector<1x4x16xf32>
    %263 = vector.shape_cast %262 : vector<1x4x16xf32> to vector<4x16xf32>
    %264 = vector.shape_cast %261 : vector<4x16xf32> to vector<1x4x16xf32>
    tpu.vector_store %arg10[%c0_115, %c0_116, %c208_117], %264 {strides = array<i32>} : memref<1x4x256xf32, #tpu.memory_space<vmem>>, vector<1x4x16xf32>,
    %c0_118 = arith.constant 0 : index
    %c0_119 = arith.constant 0 : index
    %c224 = arith.constant 224 : index
    %265 = vector.load %arg2[%c0_118, %c0_119, %c224] : memref<1x4x256xf32, #tpu.memory_space<vmem>>, vector<1x4x16xf32>
    %266 = vector.shape_cast %265 : vector<1x4x16xf32> to vector<4x16xf32>
    %267 = vector.broadcast %30 : vector<4x1xf32> to vector<4x16xf32>
    %268 = arith.subf %266, %267 : vector<4x16xf32>
    %269 = vector.broadcast %31 : vector<4x1xf32> to vector<4x16xf32>
    %270 = arith.mulf %268, %269 : vector<4x16xf32>
    %271 = vector.extract_strided_slice %53 {offsets = [0, 252], sizes = [4, 16], strides = [1, 1]} : vector<4x288xf32> to vector<4x16xf32>
    %cst_120 = arith.constant 1.000000e+00 : f32
    %272 = vector.broadcast %cst_120 : f32 to vector<4x16xf32>
    %273 = arith.addf %272, %271 : vector<4x16xf32>
    %274 = arith.mulf %270, %273 : vector<4x16xf32>
    %275 = vector.extract_strided_slice %54 {offsets = [0, 252], sizes = [4, 16], strides = [1, 1]} : vector<4x288xf32> to vector<4x16xf32>
    %276 = arith.addf %274, %275 : vector<4x16xf32>
    %c0_121 = arith.constant 0 : index
    %c0_122 = arith.constant 0 : index
    %c224_123 = arith.constant 224 : index
    %277 = vector.load %arg10[%c0_121, %c0_122, %c224_123] : memref<1x4x256xf32, #tpu.memory_space<vmem>>, vector<1x4x16xf32>
    %278 = vector.shape_cast %277 : vector<1x4x16xf32> to vector<4x16xf32>
    %279 = vector.shape_cast %276 : vector<4x16xf32> to vector<1x4x16xf32>
    tpu.vector_store %arg10[%c0_121, %c0_122, %c224_123], %279 {strides = array<i32>} : memref<1x4x256xf32, #tpu.memory_space<vmem>>, vector<1x4x16xf32>,
    %c0_124 = arith.constant 0 : index
    %c0_125 = arith.constant 0 : index
    %c240 = arith.constant 240 : index
    %280 = vector.load %arg2[%c0_124, %c0_125, %c240] : memref<1x4x256xf32, #tpu.memory_space<vmem>>, vector<1x4x16xf32>
    %281 = vector.shape_cast %280 : vector<1x4x16xf32> to vector<4x16xf32>
    %282 = vector.broadcast %30 : vector<4x1xf32> to vector<4x16xf32>
    %283 = arith.subf %281, %282 : vector<4x16xf32>
    %284 = vector.broadcast %31 : vector<4x1xf32> to vector<4x16xf32>
    %285 = arith.mulf %283, %284 : vector<4x16xf32>
    %286 = vector.extract_strided_slice %53 {offsets = [0, 270], sizes = [4, 16], strides = [1, 1]} : vector<4x288xf32> to vector<4x16xf32>
    %cst_126 = arith.constant 1.000000e+00 : f32
    %287 = vector.broadcast %cst_126 : f32 to vector<4x16xf32>
    %288 = arith.addf %287, %286 : vector<4x16xf32>
    %289 = arith.mulf %285, %288 : vector<4x16xf32>
    %290 = vector.extract_strided_slice %54 {offsets = [0, 270], sizes = [4, 16], strides = [1, 1]} : vector<4x288xf32> to vector<4x16xf32>
    %291 = arith.addf %289, %290 : vector<4x16xf32>
    %c0_127 = arith.constant 0 : index
    %c0_128 = arith.constant 0 : index
    %c240_129 = arith.constant 240 : index
    %292 = vector.load %arg10[%c0_127, %c0_128, %c240_129] : memref<1x4x256xf32, #tpu.memory_space<vmem>>, vector<1x4x16xf32>
    %293 = vector.shape_cast %292 : vector<1x4x16xf32> to vector<4x16xf32>
    %294 = vector.shape_cast %291 : vector<4x16xf32> to vector<1x4x16xf32>
    tpu.vector_store %arg10[%c0_127, %c0_128, %c240_129], %294 {strides = array<i32>} : memref<1x4x256xf32, #tpu.memory_space<vmem>>, vector<1x4x16xf32>,
    return
  }
  func.func @transform_0(%arg0: i32) -> (i32, i32, i32) {
    %c0_i32 = arith.constant 0 : i32
    %c0_i32_0 = arith.constant 0 : i32
    %c0_i32_1 = arith.constant 0 : i32
    return %arg0, %c0_i32, %c0_i32_0 : i32, i32, i32
  }
  func.func @transform_1(%arg0: i32) -> (i32, i32, i32) {
    %c0_i32 = arith.constant 0 : i32
    %c0_i32_0 = arith.constant 0 : i32
    %c0_i32_1 = arith.constant 0 : i32
    return %arg0, %c0_i32, %c0_i32_0 : i32, i32, i32
  }
  func.func @transform_2(%arg0: i32) -> (i32, i32) {
    %c0_i32 = arith.constant 0 : i32
    %c0_i32_0 = arith.constant 0 : i32
    %c0_i32_1 = arith.constant 0 : i32
    return %c0_i32, %c0_i32_0 : i32, i32
  }
  func.func @transform_3(%arg0: i32) -> (i32, i32) {
    %c0_i32 = arith.constant 0 : i32
    %c0_i32_0 = arith.constant 0 : i32
    %c0_i32_1 = arith.constant 0 : i32
    return %c0_i32, %c0_i32_0 : i32, i32
  }
  func.func @transform_4(%arg0: i32) -> (i32, i32) {
    %c0_i32 = arith.constant 0 : i32
    %c0_i32_0 = arith.constant 0 : i32
    %c0_i32_1 = arith.constant 0 : i32
    return %c0_i32, %c0_i32_0 : i32, i32
  }
  func.func @transform_5(%arg0: i32) -> (i32, i32) {
    %c0_i32 = arith.constant 0 : i32
    %c0_i32_0 = arith.constant 0 : i32
    %c0_i32_1 = arith.constant 0 : i32
    return %c0_i32, %c0_i32_0 : i32, i32
  }
  func.func @transform_6(%arg0: i32) -> (i32, i32) {
    %c0_i32 = arith.constant 0 : i32
    %c0_i32_0 = arith.constant 0 : i32
    %c0_i32_1 = arith.constant 0 : i32
    return %c0_i32, %c0_i32_0 : i32, i32
  }
  func.func @transform_7(%arg0: i32) -> (i32, i32) {
    %c0_i32 = arith.constant 0 : i32
    %c0_i32_0 = arith.constant 0 : i32
    %c0_i32_1 = arith.constant 0 : i32
    return %c0_i32, %c0_i32_0 : i32, i32
  }
  func.func @transform_8(%arg0: i32) -> (i32, i32) {
    %c0_i32 = arith.constant 0 : i32
    %c0_i32_0 = arith.constant 0 : i32
    %c0_i32_1 = arith.constant 0 : i32
    return %c0_i32, %c0_i32_0 : i32, i32
  }
  func.func @transform_9(%arg0: i32) -> (i32, i32, i32) {
    %c0_i32 = arith.constant 0 : i32
    %c0_i32_0 = arith.constant 0 : i32
    %c0_i32_1 = arith.constant 0 : i32
    return %arg0, %c0_i32, %c0_i32_0 : i32, i32, i32
  }
}

</mosaic_0001>

<bundles_post_ra>
// kernel: spade_forward.1
= control target key start
LH: loop header
LB: loop body
LE: loop exit
PB: predicated region body
PF: predicated region fallthrough
CT: control target
= control target key end

     0   :  { %s2331_s30 = smov 0   ;;  %s3133_s0 = inlined_call_operand.vmem [shape: f32[2,27,288], index: 0, kind: input, shape index: {}]   ;;  %s3134_s1 = inlined_call_operand.vmem [shape: f32[2,4,256], index: 1, kind: input, shape index: {}]   ;;  %s3135_s2 = inlined_call_operand.vmem [shape: f32[1,288], index: 2, kind: input, shape index: {}]   ;;  %s3136_s3 = inlined_call_operand.vmem [shape: f32[128,27], index: 3, kind: input, shape index: {}]   ;;  %s3137_s4 = inlined_call_operand.vmem [shape: f32[128,1], index: 4, kind: input, shape index: {}]   ;;  %s3138_s5 = inlined_call_operand.vmem [shape: f32[72,128], index: 5, kind: input, shape index: {}]   ;;  %s3139_s6 = inlined_call_operand.vmem [shape: f32[8,1], index: 6, kind: input, shape index: {}]   ;;  %s3140_s7 = inlined_call_operand.vmem [shape: f32[4,1], index: 7, kind: input, shape index: {}]   ;;  %s3141_s8 = inlined_call_operand.vmem [shape: f32[4,1], index: 8, kind: input, shape index: {}]   ;;  %s3142_s9 = inlined_call_operand.vmem [shape: f32[2,4,256], index: 9, kind: output, shape index: {}]  }
   0x1 LB: > { %s2020_s10 = sadd.s32 4294967295, %s2255_s30   ;;  %p2024_p0 = scmp.ge.s32.totalorder %s2255_s30, 1  ;;  %s2255_s30 = sphi %s2331_s30, %s19_s30  }
   0x2   : > { %p297_p1 = scmp.lt.s32.totalorder %s2255_s30, 3 }
   0x4   : > { %p298_p2 = pnand %p2024_p0, %p297_p1 }
   0x5   : > { %p338_p3 = scmp.lt.s32.totalorder (!%p298_p2), %s2020_s10, 1  ;;  %s2259_s25 = smov (!%p298_p2), 19  }
   0x6   : > { %301 = sbr.rel (%p298_p2) target bundleno = 980 (0x3d4), region = 56  ;;  %s2261_s29 = smov (!%p298_p2), 127  }
   0x7   : > { %s2263_s12 = smov (!%p298_p2), 110   ;;  %s2264_s13 = smov (!%p298_p2), 109  }
   0x8   : > { %s2266_s14 = smov (!%p298_p2), 92   ;;  %s2267_s15 = smov (!%p298_p2), 91  }
   0x9   : > { %s2268_s17 = smov (!%p298_p2), 90   ;;  %s2269_s26 = smov (!%p298_p2), 120  }
   0xa   : > { %s2270_s27 = smov (!%p298_p2), 124   ;;  %s2276_s18 = smov (!%p298_p2), 104  }
   0xb   : > { %v2257_v0 = vmov 0.0   ;;  %s3144_s10 = smov (!%p338_p3, %s2020_s10), 1  ;;  %v2258_v1 = vmov 0   ;;  %vm556_vm0 = vcmask 1042432   ;;  %v418_v2 = vld [vmem:[%s3137_s4 + $0x78] sm:$0xff]  ;;  %v416_v3 = vld [vmem:[%s3137_s4 + $0x68] sm:$0xff]  ;;  %v758_v57 = vlaneseq }
   0xc   : > { %627 = vmatprep.mubr.f32.mxu0 %v2257_v0  ;;  %699 = vmatprep.mubr.f32.mxu1 %v2257_v0  ;;  %s2214_s11 = smul.u32 96, %s3144_s10  ;;  %v387_v12 = vld [vmem:[%s3136_s3] sm:$0xff]  ;;  %vm507_vm1 = vcmask 220160   ;;  %v417_v15 = vld [vmem:[%s3137_s4 + $0x70] sm:$0xff]  ;;  %v388_v17 = vld [vmem:[%s3136_s3 + $0x8] sm:$0xff]  ;;  %vm353_vm2 = vcmask 154624  }
   0xd   : > { %2247 = vset.pattern.permute.xlu0 %v2258_v1  ;;  %2248 = vset.pattern.permute.xlu1 %v2258_v1  ;;  %v2373_v13 = vld [vmem:[%s3136_s3 + $0x60] sm:$0xff]  ;;  %v2393_v18 = vld [vmem:[%s3136_s3 + $0x68] sm:$0xff]  ;;  %v414_v20 = vld [vmem:[%s3137_s4 + $0x58] sm:$0xff]  ;;  %366 = vst.msk [vmem:[#allocation2 + $0x120] sm:$0xff] %vm353_vm2, %v2257_v0  ;;  %v759_v60 = vshrl.u32 %v758_v57, 7  ;;  %vm370_vm3 = vcmask 572824  }
   0xe   : > { %s2350_s16 = scalar_lea.vmem %s3133_s0, %s2214_s11  ;;  %504 = vperm.xlu0 %2247, %v418_v2   ;;  %494 = vperm.xlu1 %2248, %v416_v3   ;;  %v415_v16 = vld [vmem:[%s3137_s4 + $0x60] sm:$0xff]  ;;  %v413_v21 = vld [vmem:[%s3137_s4 + $0x50] sm:$0xff]  ;;  %v412_v25 = vld [vmem:[%s3137_s4 + $0x48] sm:$0xff]  ;;  %354 = vst.msk [vmem:[#allocation2] sm:$0xff] %vm353_vm2, %v2257_v0  ;;  %vm2260_vm4 = vmmov 0   ;;  %vm960_vm5 = vcmask 1047704  }
   0xf   : > { %v426_v4 = vld [vmem:[%s2350_s16 + $0x50] sm:$0x7]  ;;  %v425_v5 = vld [vmem:[%s2350_s16 + $0x48] sm:$0x7]  ;;  %v424_v6 = vld [vmem:[%s2350_s16 + $0x38] sm:$0xff]  ;;  %355 = vst.msk [vmem:[#allocation2 + $0x18] sm:$0xff] %vm353_vm2, %v2257_v0 }
  0x10   : > { %2030 = vmatprep.subr.msk.mxu0 %vm556_vm0, %v426_v4  ;;  %2206 = vmatprep.subr.msk.mxu1 %vm556_vm0, %v426_v4  ;;  %v423_v7 = vld [vmem:[%s2350_s16 + $0x30] sm:$0xff]  ;;  %v422_v8 = vld [vmem:[%s2350_s16 + $0x20] sm:$0xff]  ;;  %v421_v9 = vld [vmem:[%s2350_s16 + $0x18] sm:$0xff]  ;;  %356 = vst.msk [vmem:[#allocation2 + $0x30] sm:$0xff] %vm353_vm2, %v2257_v0  ;;  %v760_v61 = vsub.s32 0, %v759_v60  ;;  %v764_v63 = vsub.s32 1, %v759_v60 }
  0x11   : > { %2031 = vmatpush1.msk.msra.mxu0 %vm556_vm0, %v425_v5  ;;  %2210 = vmatpush1.msk.msra.mxu1 %vm556_vm0, %v425_v5  ;;  %v420_v10 = vld [vmem:[%s2350_s16 + $0x8] sm:$0xff]  ;;  %v419_v11 = vld [vmem:[%s2350_s16] sm:$0xff]  ;;  %v1012_v14 = vld [vmem:[%s2350_s16 + $0x58] sm:$0x7]  ;;  %357 = vst.msk [vmem:[#allocation2 + $0x48] sm:$0xff] %vm353_vm2, %v2257_v0  ;;  %vm1264_vm6 = vcmask 416920  }
  0x12   : > { %589 = vmatprep.subr.mxu0 %v424_v6  ;;  %2207 = vmatprep.subr.mxu1 %v424_v6  ;;  %v1011_v19 = vld [vmem:[%s2350_s16 + $0x40] sm:$0xff]  ;;  %v389_v22 = vld [vmem:[%s3136_s3 + $0x10] sm:$0xff]  ;;  %v1010_v24 = vld [vmem:[%s2350_s16 + $0x28] sm:$0xff]  ;;  %358 = vst.msk [vmem:[#allocation2 + $0x60] sm:$0xff] %vm353_vm2, %v2257_v0  ;;  %s2262_s11 = smov 126   ;;  %vm1587_vm7 = vcmask 1039360  }
  0x13   : > { %590 = vmatpush1.msra.mxu0 %v423_v7  ;;  %2211 = vmatpush1.msra.mxu1 %v423_v7  ;;  %v2415_v23 = vld [vmem:[%s3136_s3 + $0x70] sm:$0xff]  ;;  %v411_v26 = vld [vmem:[%s3137_s4 + $0x40] sm:$0xff]  ;;  %v390_v27 = vld [vmem:[%s3136_s3 + $0x18] sm:$0xff]  ;;  %359 = vst.msk [vmem:[#allocation2 + $0x78] sm:$0xff] %vm353_vm2, %v2257_v0  ;;  %vm1605_vm8 = vcmask 1031168   ;;  %vm1623_vm9 = vcmask 900096  }
  0x14   : > { %591 = vmatprep.subr.mxu0 %v422_v8  ;;  %2208 = vmatprep.subr.mxu1 %v422_v8  ;;  %v2435_v28 = vld [vmem:[%s3136_s3 + $0x78] sm:$0xff]  ;;  %v1009_v29 = vld [vmem:[%s2350_s16 + $0x10] sm:$0xff]  ;;  %v391_v32 = vld [vmem:[%s3136_s3 + $0x20] sm:$0xff]  ;;  %360 = vst.msk [vmem:[#allocation2 + $0x90] sm:$0xff] %vm353_vm2, %v2257_v0  ;;  %s2265_s16 = smov 108   ;;  %vm1641_vm10 = vcmask 891904  }
  0x15   : > { %592 = vmatpush1.msra.mxu0 %v421_v9  ;;  %2212 = vmatpush1.msra.mxu1 %v421_v9  ;;  %v410_v30 = vld [vmem:[%s3137_s4 + $0x38] sm:$0xff]  ;;  %v409_v31 = vld [vmem:[%s3137_s4 + $0x30] sm:$0xff]  ;;  %v408_v33 = vld [vmem:[%s3137_s4 + $0x28] sm:$0xff]  ;;  %361 = vst.msk [vmem:[#allocation2 + $0xa8] sm:$0xff] %vm353_vm2, %v2257_v0  ;;  %vm1659_vm11 = vcmask 883712   ;;  %vm1677_vm12 = vcmask 752640  }
  0x16   : > { %593 = vmatprep.subr.mxu0 %v420_v10  ;;  %2209 = vmatprep.subr.mxu1 %v420_v10  ;;  %v407_v34 = vld [vmem:[%s3137_s4 + $0x20] sm:$0xff]  ;;  %v392_v35 = vld [vmem:[%s3136_s3 + $0x28] sm:$0xff]  ;;  %v406_v36 = vld [vmem:[%s3137_s4 + $0x18] sm:$0xff]  ;;  %362 = vst.msk [vmem:[#allocation2 + $0xc0] sm:$0xff] %vm353_vm2, %v2257_v0  ;;  %vm1695_vm13 = vcmask 744448   ;;  %vm1713_vm14 = vcmask 736256  }
  0x17   : > { %594 = vmatpush1.msra.mxu0 %v419_v11  ;;  %2213 = vmatpush1.msra.mxu1 %v419_v11  ;;  %v405_v37 = vld [vmem:[%s3137_s4 + $0x10] sm:$0xff]  ;;  %v404_v39 = vld [vmem:[%s3137_s4 + $0x8] sm:$0xff]  ;;  %v403_v40 = vld [vmem:[%s3137_s4] sm:$0xff]  ;;  %363 = vst.msk [vmem:[#allocation2 + $0xd8] sm:$0xff] %vm353_vm2, %v2257_v0  ;;  %s2068_s22 = sshll.u32 %s3144_s10, 3  ;;  %s2271_s10 = smov 122  }
  0x18   : > { %2032 = vmatmul.mubr.msk.f32.vlgmr.msra.gmra.mxu0 %vm507_vm1, %v387_v12  ;;  %2044 = vmatmul.mubr.msk.f32.vlgmr.msra.gmra.mxu1 %vm507_vm1, %v2373_v13  ;;  %v393_v38 = vld [vmem:[%s3136_s3 + $0x30] sm:$0xff]  ;;  %v394_v41 = vld [vmem:[%s3136_s3 + $0x38] sm:$0xff]  ;;  %v395_v42 = vld [vmem:[%s3136_s3 + $0x40] sm:$0xff]  ;;  %364 = vst.msk [vmem:[#allocation2 + $0xf0] sm:$0xff] %vm353_vm2, %v2257_v0  ;;  %vm1741_vm15 = vcmask 125952   ;;  %s2277_s19 = smov 102  }
  0x19   : > { %633 = vmatprep.mubr.f32.mxu0 %v2257_v0  ;;  %705 = vmatprep.mubr.f32.mxu1 %v2257_v0  ;;  %v396_v43 = vld [vmem:[%s3136_s3 + $0x48] sm:$0xff]  ;;  %v397_v44 = vld [vmem:[%s3136_s3 + $0x50] sm:$0xff]  ;;  %v398_v45 = vld [vmem:[%s3136_s3 + $0x58] sm:$0xff]  ;;  %365 = vst.msk [vmem:[#allocation2 + $0x108] sm:$0xff] %vm353_vm2, %v2257_v0  ;;  %s2278_s20 = smov 100   ;;  %s2279_s21 = smov 114  }
  0x1a   : > { %2115 = vmatprep.subr.msk.mxu1 %vm556_vm0, %v1012_v14  ;;  %499 = vperm.xlu0 %2247, %v417_v15   ;;  %367 = vst.msk [vmem:[#allocation2 + $0x138] sm:$0xff] %vm353_vm2, %v2257_v0  ;;  %368 = vst.msk [vmem:[#allocation2 + $0x150] sm:$0xff] %vm353_vm2, %v2257_v0  ;;  %v756_v62 = vld [vmem:[%s3135_s2] sm:$0x3] }
  0x1b   : > { %2116 = vmatpush3.msk.msra.mxu1 %vm556_vm0, %v1012_v14  ;;  %489 = vperm.xlu1 %2248, %v415_v16   ;;  %369 = vst.msk [vmem:[#allocation2 + $0x168] sm:$0xff] %vm353_vm2, %v2257_v0  ;;  %v2625_v6 = vrot.slane %v756_v62, %v760_v61  ;;  %v2628_v9 = vrot.slane %v756_v62, %v764_v63  ;;  %vm1755_vm0 = vcmask 257152  }
  0x1c   : > { %2033 = vmatmul.mubr.msk.f32.gmra.mxu0 %vm507_vm1, %v388_v17  ;;  %2045 = vmatmul.mubr.msk.f32.gmra.mxu1 %vm507_vm1, %v2393_v18  ;;  %383 = vst.msk [vmem:[#allocation2 + $0x130] sm:$0xff] %vm370_vm3, %v2257_v0  ;;  %371 = vst.msk [vmem:[#allocation2 + $0x10] sm:$0xff] %vm370_vm3, %v2257_v0 }
  0x1d   : > { %639 = vmatprep.mubr.f32.mxu0 %v2257_v0  ;;  %711 = vmatprep.mubr.f32.mxu1 %v2257_v0  ;;  %372 = vst.msk [vmem:[#allocation2 + $0x28] sm:$0xff] %vm370_vm3, %v2257_v0  ;;  %373 = vst.msk [vmem:[#allocation2 + $0x40] sm:$0xff] %vm370_vm3, %v2257_v0 }
  0x1e   : > { %2117 = vmatprep.subr.mxu1 %v1011_v19  ;;  %484 = vperm.xlu0 %2247, %v414_v20   ;;  %374 = vst.msk [vmem:[#allocation2 + $0x58] sm:$0xff] %vm370_vm3, %v2257_v0  ;;  %375 = vst.msk [vmem:[#allocation2 + $0x70] sm:$0xff] %vm370_vm3, %v2257_v0 }
  0x1f   : > { %2118 = vmatpush3.msra.mxu1 %v1011_v19  ;;  %479 = vperm.xlu1 %2248, %v413_v21   ;;  %376 = vst.msk [vmem:[#allocation2 + $0x88] sm:$0xff] %vm370_vm3, %v2257_v0  ;;  %377 = vst.msk [vmem:[#allocation2 + $0xa0] sm:$0xff] %vm370_vm3, %v2257_v0 }
  0x20   : > { %2034 = vmatmul.mubr.msk.f32.gmra.mxu0 %vm507_vm1, %v389_v22  ;;  %2046 = vmatmul.mubr.msk.f32.gmra.mxu1 %vm507_vm1, %v2415_v23  ;;  %378 = vst.msk [vmem:[#allocation2 + $0xb8] sm:$0xff] %vm370_vm3, %v2257_v0  ;;  %379 = vst.msk [vmem:[#allocation2 + $0xd0] sm:$0xff] %vm370_vm3, %v2257_v0 }
  0x21   : > { %645 = vmatprep.mubr.f32.mxu0 %v2257_v0  ;;  %717 = vmatprep.mubr.f32.mxu1 %v2257_v0  ;;  %380 = vst.msk [vmem:[#allocation2 + $0xe8] sm:$0xff] %vm370_vm3, %v2257_v0  ;;  %381 = vst.msk [vmem:[#allocation2 + $0x100] sm:$0xff] %vm370_vm3, %v2257_v0 }
  0x22   : > { %2119 = vmatprep.subr.mxu1 %v1010_v24  ;;  %474 = vperm.xlu0 %2247, %v412_v25   ;;  %382 = vst.msk [vmem:[#allocation2 + $0x118] sm:$0xff] %vm370_vm3, %v2257_v0  ;;  %384 = vst.msk [vmem:[#allocation2 + $0x148] sm:$0xff] %vm370_vm3, %v2257_v0 }
  0x23   : > { %2120 = vmatpush3.msra.mxu1 %v1010_v24  ;;  %469 = vperm.xlu1 %2248, %v411_v26   ;;  %385 = vst.msk [vmem:[#allocation2 + $0x160] sm:$0xff] %vm370_vm3, %v2257_v0  ;;  %386 = vst.msk [vmem:[#allocation2 + $0x178] sm:$0xff] %vm370_vm3, %v2257_v0  ;;  %vm1794_vm3 = vcmask 650752  }
  0x24   : > { %2035 = vmatmul.mubr.msk.f32.gmra.mxu0 %vm507_vm1, %v390_v27  ;;  %2047 = vmatmul.mubr.msk.f32.gmra.mxu1 %vm507_vm1, %v2435_v28 }
  0x25   : > { %2121 = vmatprep.subr.mxu1 %v1009_v29  ;;  %651 = vmatprep.mubr.f32.mxu0 %v2257_v0 }
  0x26   : > { %2122 = vmatpush3.msra.mxu1 %v1009_v29  ;;  %2123 = vmatprep.mubr.msk.f32.mxu1 %vm507_vm1, %v387_v12 }
  0x27   : > { %464 = vperm.xlu0 %2247, %v410_v30   ;;  %459 = vperm.xlu1 %2248, %v409_v31  }
  0x28   : > { %2036 = vmatmul.mubr.msk.f32.gmra.mxu0 %vm507_vm1, %v391_v32  ;;  %2124 = vmatmul.mubr.msk.f32.vlgmr.msra.gmra.mxu1 %vm507_vm1, %v388_v17 }
  0x29   : > { %657 = vmatprep.mubr.f32.mxu0 %v2257_v0  ;;  %2126 = vmatprep.mubr.msk.f32.mxu1 %vm507_vm1, %v389_v22 }
  0x2a   : > { %2147 = vmatprep.subr.mxu0 %v2257_v0 }
  0x2b   : > { %454 = vperm.xlu0 %2247, %v408_v33   ;;  %449 = vperm.xlu1 %2248, %v407_v34  }
  0x2c   : > { %2037 = vmatmul.mubr.msk.f32.gmra.mxu0 %vm507_vm1, %v392_v35  ;;  %2127 = vmatmul.mubr.msk.f32.gmra.mxu1 %vm507_vm1, %v390_v27 }
  0x2d   : > { %663 = vmatprep.mubr.f32.mxu0 %v2257_v0  ;;  %2129 = vmatprep.mubr.msk.f32.mxu1 %vm507_vm1, %v391_v32 }
  0x2f   : > { %444 = vperm.xlu0 %2247, %v406_v36   ;;  %439 = vperm.xlu1 %2248, %v405_v37  }
  0x30   : > { %2038 = vmatmul.mubr.msk.f32.gmra.mxu0 %vm507_vm1, %v393_v38  ;;  %2130 = vmatmul.mubr.msk.f32.gmra.mxu1 %vm507_vm1, %v392_v35 }
  0x31   : > { %669 = vmatprep.mubr.f32.mxu0 %v2257_v0  ;;  %2132 = vmatprep.mubr.msk.f32.mxu1 %vm507_vm1, %v393_v38 }
  0x33   : > { %434 = vperm.xlu0 %2247, %v404_v39   ;;  %429 = vperm.xlu1 %2248, %v403_v40  }
  0x34   : > { %2039 = vmatmul.mubr.msk.f32.gmra.mxu0 %vm507_vm1, %v394_v41  ;;  %2133 = vmatmul.mubr.msk.f32.gmra.mxu1 %vm507_vm1, %v394_v41 }
  0x35   : > { %675 = vmatprep.mubr.f32.mxu0 %v2257_v0  ;;  %2135 = vmatprep.mubr.msk.f32.mxu1 %vm507_vm1, %v395_v42 }
  0x38   : > { %2040 = vmatmul.mubr.msk.f32.gmra.mxu0 %vm507_vm1, %v395_v42  ;;  %2136 = vmatmul.mubr.msk.f32.gmra.mxu1 %vm507_vm1, %v396_v43 }
  0x39   : > { %681 = vmatprep.mubr.f32.mxu0 %v2257_v0  ;;  %2138 = vmatprep.mubr.msk.f32.mxu1 %vm507_vm1, %v397_v44 }
  0x3c   : > { %2041 = vmatmul.mubr.msk.f32.gmra.mxu0 %vm507_vm1, %v396_v43  ;;  %2139 = vmatmul.mubr.msk.f32.gmra.mxu1 %vm507_vm1, %v398_v45 }
  0x3d   : > { %687 = vmatprep.mubr.f32.mxu0 %v2257_v0  ;;  %2141 = vmatprep.mubr.msk.f32.mxu1 %vm507_vm1, %v2373_v13 }
  0x40   : > { %2042 = vmatmul.mubr.msk.f32.gmra.mxu0 %vm507_vm1, %v397_v44  ;;  %2142 = vmatmul.mubr.msk.f32.gmra.mxu1 %vm507_vm1, %v2393_v18 }
  0x41   : > { %693 = vmatprep.mubr.f32.mxu0 %v2257_v0  ;;  %2144 = vmatprep.mubr.msk.f32.mxu1 %vm507_vm1, %v2415_v23 }
  0x44   : > { %2043 = vmatmul.mubr.msk.f32.gmra.mxu0 %vm507_vm1, %v398_v45  ;;  %2145 = vmatmul.mubr.msk.f32.gmra.mxu1 %vm507_vm1, %v2435_v28  ;;  %vm1768_vm1 = vcmask 388352  }
  0x45   : > { %1405 = vmatprep.mubr.f32.mxu1 %v2257_v0  ;;  %2179 = vmatprep.mubr.msk.f32.mxu0 %vm2260_vm4, %v2257_v0 }
  0x89   : > { %v2527_v46 = vpop.permute.xlu1 %494  ;;  %v2529_v47 = vpop.permute.xlu0 %504 }
  0x95   : > { %v2533_v49 = vpop.permute.xlu0 %499 }
  0x96   : > { %v2531_v48 = vpop.permute.xlu1 %489 }
  0x99   : > { %v2537_v51 = vpop.permute.xlu0 %484 }
  0x9a   : > { %v2535_v50 = vpop.permute.xlu1 %479 }
  0x9d   : > { %v2573_v53 = vpop.permute.xlu0 %474 }
  0x9e   : > { %v2539_v52 = vpop.permute.xlu1 %469 }
  0xa2   : > { %v2575_v54 = vpop.permute.xlu1 %459  ;;  %v2577_v55 = vpop.permute.xlu0 %464 }
  0xa6   : > { %v2579_v56 = vpop.permute.xlu1 %449  ;;  %v2581_v58 = vpop.permute.xlu0 %454 }
  0xaa   : > { %v2583_v59 = vpop.permute.xlu1 %439  ;;  %v2620_v1 = vpop.permute.xlu0 %444 }
  0xae   : > { %v2622_v2 = vpop.permute.xlu1 %429  ;;  %v2632_v17 = vpop.permute.xlu0 %434 }
  0xd8   : > { %v629_v3 = vpop.f32.mrf.mxu0  ;;  %v701_v4 = vpop.f32.mrf.mxu1 }
  0xd9   : > { %v630_v5 = vadd.f32 %v629_v3, %v2622_v2  ;;  %v702_v7 = vadd.f32 %v701_v4, %v2531_v48 }
  0xda   : > { %v631_v8 = vpop.f32.mrf.mxu0  ;;  %v703_v10 = vpop.f32.mrf.mxu1 }
  0xdb   : > { %v724_v11 = vmax.f32 %v630_v5, 0.0  ;;  %v748_v12 = vmax.f32 %v702_v7, 0.0  ;;  %v632_v13 = vadd.f32 %v631_v8, %v2622_v2  ;;  %v704_v14 = vadd.f32 %v703_v10, %v2531_v48 }
  0xdc   : > { %v635_v15 = vpop.f32.mrf.mxu0  ;;  %v707_v16 = vpop.f32.mrf.mxu1 }
  0xdd   : > { %v2635_v18 = vmul.f32 %v2625_v6, %v724_v11  ;;  %v792_v19 = vmul.f32 %v2625_v6, %v748_v12  ;;  %v725_v20 = vmax.f32 %v632_v13, 0.0  ;;  %v749_v21 = vmax.f32 %v704_v14, 0.0 }
  0xde   : > { %v636_v22 = vadd.f32 %v635_v15, %v2632_v17  ;;  %v708_v23 = vadd.f32 %v707_v16, %v2527_v46  ;;  %v637_v24 = vpop.f32.mrf.mxu0  ;;  %v709_v25 = vpop.f32.mrf.mxu1 }
  0xdf   : > { %v2641_v26 = vmul.f32 %v2628_v9, %v725_v20  ;;  %v793_v27 = vmul.f32 %v2628_v9, %v749_v21  ;;  %v638_v28 = vadd.f32 %v637_v24, %v2632_v17  ;;  %v710_v29 = vadd.f32 %v709_v25, %v2527_v46  ;;  %880 = vrot.lane.b32.xlu1 %v792_v19, %s2259_s25 }
  0xe0   : > { %v726_v30 = vmax.f32 %v636_v22, 0.0  ;;  %v750_v31 = vmax.f32 %v708_v23, 0.0  ;;  %v641_v32 = vpop.f32.mrf.mxu0  ;;  %v713_v33 = vpop.f32.mrf.mxu1 }
  0xe1   : > { %v727_v34 = vmax.f32 %v638_v28, 0.0  ;;  %v751_v35 = vmax.f32 %v710_v29, 0.0  ;;  %v642_v36 = vadd.f32 %v641_v32, %v2583_v59  ;;  %v714_v37 = vadd.f32 %v713_v33, %v2533_v49  ;;  %882 = vrot.lane.b32.xlu0 %v793_v27, %s2259_s25 }
  0xe2   : > { %v2651_v38 = vmul.f32 %v2625_v6, %v726_v30  ;;  %v794_v39 = vmul.f32 %v2625_v6, %v750_v31  ;;  %v643_v40 = vpop.f32.mrf.mxu0  ;;  %v715_v41 = vpop.f32.mrf.mxu1 }
  0xe3   : > { %v2655_v42 = vmul.f32 %v2628_v9, %v727_v34  ;;  %v795_v43 = vmul.f32 %v2628_v9, %v751_v35  ;;  %v728_v44 = vmax.f32 %v642_v36, 0.0  ;;  %v752_v45 = vmax.f32 %v714_v37, 0.0 }
  0xe4   : > { %v644_v57 = vadd.f32 %v643_v40, %v2583_v59  ;;  %v716_v60 = vadd.f32 %v715_v41, %v2533_v49  ;;  %v647_v61 = vpop.f32.mrf.mxu0  ;;  %v719_v62 = vpop.f32.mrf.mxu1 }
  0xe5   : > { %v2661_v63 = vmul.f32 %v2625_v6, %v728_v44  ;;  %v720_v3 = vadd.f32 %v719_v62, %v2529_v47  ;;  %884 = vrot.lane.b32.xlu0 %v794_v39, %s2259_s25  ;;  %886 = vrot.lane.b32.xlu1 %v795_v43, %s2259_s25  ;;  %v796_v10 = vmul.f32 %v2625_v6, %v752_v45 }
  0xe6   : > { %v729_v4 = vmax.f32 %v644_v57, 0.0  ;;  %v753_v5 = vmax.f32 %v716_v60, 0.0  ;;  %v2666_v7 = vpop.f32.mrf.mxu0  ;;  %v721_v8 = vpop.f32.mrf.mxu1  ;;  %v648_v11 = vadd.f32 %v647_v61, %v2620_v1 }
  0xe7   : > { %v754_v12 = vmax.f32 %v720_v3, 0.0  ;;  %v722_v13 = vadd.f32 %v721_v8, %v2529_v47 }
  0xe8   : > { %v2672_v14 = vmul.f32 %v2628_v9, %v729_v4  ;;  %v797_v15 = vmul.f32 %v2628_v9, %v753_v5  ;;  %v653_v16 = vpop.f32.mrf.mxu0  ;;  %v2675_v19 = vpop.f32.mrf.mxu1  ;;  %v730_v24 = vmax.f32 %v648_v11, 0.0 }
  0xe9   : > { %v755_v20 = vmax.f32 %v722_v13, 0.0  ;;  %888 = vrot.lane.b32.xlu0 %v796_v10, %s2259_s25  ;;  %v654_v21 = vadd.f32 %v653_v16, %v2579_v56  ;;  %v798_v25 = vmul.f32 %v2625_v6, %v754_v12 }
  0xea   : > { %890 = vrot.lane.b32.xlu1 %v797_v15, %s2259_s25  ;;  %v655_v22 = vpop.f32.mrf.mxu0  ;;  %v2680_v23 = vpop.f32.mrf.mxu1  ;;  %v774_v34 = vmul.f32 %v2625_v6, %v730_v24 }
  0xeb   : > { %v799_v27 = vmul.f32 %v2628_v9, %v755_v20  ;;  %v656_v28 = vadd.f32 %v655_v22, %v2579_v56  ;;  %v732_v29 = vmax.f32 %v654_v21, 0.0 }
  0xec   : > { %v659_v30 = vpop.f32.mrf.mxu0  ;;  %v2685_v31 = vpop.f32.mrf.mxu1 }
  0xed   : > { %892 = vrot.lane.b32.xlu0 %v798_v25, %s2259_s25  ;;  %v733_v35 = vmax.f32 %v656_v28, 0.0  ;;  %v660_v36 = vadd.f32 %v659_v30, %v2581_v58  ;;  %v776_v37 = vmul.f32 %v2625_v6, %v732_v29 }
  0xee   : > { %894 = vrot.lane.b32.xlu1 %v799_v27, %s2259_s25  ;;  %v661_v32 = vpop.f32.mrf.mxu0  ;;  %v2689_v33 = vpop.f32.mrf.mxu1 }
  0xef   : > { %v662_v39 = vadd.f32 %v661_v32, %v2581_v58  ;;  %v777_v60 = vmul.f32 %v2628_v9, %v733_v35  ;;  %v734_v61 = vmax.f32 %v660_v36, 0.0 }
  0xf0   : > { %v665_v40 = vpop.f32.mrf.mxu0  ;;  %v2695_v41 = vpop.f32.mrf.mxu1 }
  0xf1   : > { %v666_v43 = vadd.f32 %v665_v40, %v2575_v54  ;;  %844 = vrot.lane.b32.xlu0 %v774_v34, %s2259_s25  ;;  %v735_v44 = vmax.f32 %v662_v39, 0.0  ;;  %v778_v12 = vmul.f32 %v2625_v6, %v734_v61  ;;  %v2723_v39 = vld [vmem:[%s3135_s2 + $0x2] ss:$0 sm:$0xff] }
  0xf2   : > { %848 = vrot.lane.b32.xlu1 %v776_v37, %s2259_s25  ;;  %v667_v45 = vpop.f32.mrf.mxu0  ;;  %v2700_v57 = vpop.f32.mrf.mxu1 }
  0xf3   : > { %v668_v62 = vadd.f32 %v667_v45, %v2575_v54  ;;  %v779_v3 = vmul.f32 %v2628_v9, %v735_v44  ;;  %v736_v4 = vmax.f32 %v666_v43, 0.0 }
  0xf4   : > { %v671_v5 = vpop.f32.mrf.mxu0  ;;  %v2134_v8 = vpop.f32.mrf.mxu1 }
  0xf5   : > { %850 = vrot.lane.b32.xlu0 %v777_v60, %s2259_s25  ;;  %v737_v13 = vmax.f32 %v668_v62, 0.0  ;;  %v672_v15 = vadd.f32 %v671_v5, %v2577_v55  ;;  %v780_v20 = vmul.f32 %v2625_v6, %v736_v4  ;;  %v1118_v32 = vadd.f32 %v2134_v8, %v2577_v55 }
  0xf6   : > { %854 = vrot.lane.b32.xlu1 %v779_v3, %s2259_s25  ;;  %v673_v10 = vpop.f32.mrf.mxu0  ;;  %v1112_v11 = vpop.f32.mrf.mxu1 }
  0xf7   : > { %v674_v16 = vadd.f32 %v673_v10, %v2577_v55  ;;  %v1113_v21 = vadd.f32 %v1112_v11, %v2575_v54  ;;  %v781_v29 = vmul.f32 %v2628_v9, %v737_v13  ;;  %v738_v30 = vmax.f32 %v672_v15, 0.0 }
  0xf8   : > { %v677_v22 = vpop.f32.mrf.mxu0  ;;  %v2137_v24 = vpop.f32.mrf.mxu1  ;;  %v1168_v43 = vmax.f32 %v1118_v32, 0.0 }
  0xf9   : > { %v739_v25 = vmax.f32 %v674_v16, 0.0  ;;  %852 = vrot.lane.b32.xlu0 %v778_v12, %s2259_s25  ;;  %v1167_v35 = vmax.f32 %v1113_v21, 0.0  ;;  %v678_v36 = vadd.f32 %v677_v22, %v2539_v52  ;;  %v782_v40 = vmul.f32 %v2625_v6, %v738_v30 }
  0xfa   : > { %856 = vrot.lane.b32.xlu1 %v780_v20, %s2259_s25  ;;  %v679_v27 = vpop.f32.mrf.mxu0  ;;  %v1122_v28 = vpop.f32.mrf.mxu1  ;;  %v1128_v55 = vadd.f32 %v2137_v24, %v2573_v53  ;;  %v1191_v3 = vmul.f32 %v2723_v39, %v1168_v43 }
  0xfb   : > { %v783_v34 = vmul.f32 %v2628_v9, %v739_v25  ;;  %v1190_v44 = vmul.f32 %v2723_v39, %v1167_v35  ;;  %v740_v45 = vmax.f32 %v678_v36, 0.0  ;;  %v1123_v60 = vadd.f32 %v1122_v28, %v2539_v52 }
  0xfc   : > { %v683_v54 = vpop.f32.mrf.mxu0  ;;  %v2140_v37 = vpop.f32.mrf.mxu1  ;;  %v1170_v4 = vmax.f32 %v1128_v55, 0.0  ;;  %v680_v5 = vadd.f32 %v679_v27, %v2539_v52 }
  0xfd   : > { %858 = vrot.lane.b32.xlu0 %v781_v29, %s2259_s25  ;;  %v784_v8 = vmul.f32 %v2625_v6, %v740_v45  ;;  %v1169_v10 = vmax.f32 %v1123_v60, 0.0  ;;  %v684_v16 = vadd.f32 %v683_v54, %v2573_v53  ;;  %v1138_v28 = vadd.f32 %v2140_v37, %v2537_v51 }
  0xfe   : > { %862 = vrot.lane.b32.xlu1 %v783_v34, %s2259_s25  ;;  %v685_v61 = vpop.f32.mrf.mxu0  ;;  %v1132_v62 = vpop.f32.mrf.mxu1  ;;  %v1193_v13 = vmul.f32 %v2723_v39, %v1170_v4  ;;  %v741_v15 = vmax.f32 %v680_v5, 0.0 }
  0xff   : > { %v686_v11 = vadd.f32 %v685_v61, %v2573_v53  ;;  %v1192_v20 = vmul.f32 %v2723_v39, %v1169_v10  ;;  %v1133_v52 = vadd.f32 %v1132_v62, %v2535_v50  ;;  %v742_v27 = vmax.f32 %v684_v16, 0.0 }
 0x100   : > { %v2143_v12 = vpop.f32.mrf.mxu1  ;;  %v689_v22 = vpop.f32.mrf.mxu0  ;;  %v785_v25 = vmul.f32 %v2628_v9, %v741_v15  ;;  %v1172_v36 = vmax.f32 %v1138_v28, 0.0  ;;  %v650_v15 = vadd.f32 %v2666_v7, %v2620_v1 }
 0x101   : > { %860 = vrot.lane.b32.xlu0 %v782_v40, %s2259_s25  ;;  %v743_v21 = vmax.f32 %v686_v11, 0.0  ;;  %v1171_v30 = vmax.f32 %v1133_v52, 0.0  ;;  %v690_v53 = vadd.f32 %v689_v22, %v2535_v50  ;;  %v786_v35 = vmul.f32 %v2625_v6, %v742_v27 }
 0x102   : > { %1228 = vrot.lane.b32.xlu1 %v1190_v44, %s2259_s25  ;;  %v1142_v24 = vpop.f32.mrf.mxu1  ;;  %v691_v32 = vpop.f32.mrf.mxu0  ;;  %v1148_v54 = vadd.f32 %v2143_v12, %v2527_v46  ;;  %v1195_v45 = vmul.f32 %v2723_v39, %v1172_v36  ;;  %v731_v22 = vmax.f32 %v650_v15, 0.0  ;;  %v1103_v27 = vadd.f32 %v2700_v57, %v2579_v56 }
 0x103   : > { %v787_v29 = vmul.f32 %v2628_v9, %v743_v21  ;;  %v1194_v40 = vmul.f32 %v2723_v39, %v1171_v30  ;;  %v744_v43 = vmax.f32 %v690_v53, 0.0  ;;  %v1143_v37 = vadd.f32 %v1142_v24, %v2531_v48 }
 0x104   : > { %v2146_v34 = vpop.f32.mrf.mxu1  ;;  %v695_v55 = vpop.f32.mrf.mxu0  ;;  %v1174_v60 = vmax.f32 %v1148_v54, 0.0  ;;  %v692_v61 = vadd.f32 %v691_v32, %v2535_v50  ;;  %v1093_v57 = vadd.f32 %v2689_v33, %v2583_v59 }
 0x105   : > { %1230 = vrot.lane.b32.xlu0 %v1191_v3, %s2259_s25  ;;  %v788_v62 = vmul.f32 %v2625_v6, %v744_v43  ;;  %v1173_v3 = vmax.f32 %v1143_v37, 0.0  ;;  %v696_v12 = vadd.f32 %v695_v55, %v2537_v51 }
 0x106   : > { %864 = vrot.lane.b32.xlu1 %v784_v8, %s2259_s25  ;;  %v1152_v44 = vpop.f32.mrf.mxu1  ;;  %v697_v4 = vpop.f32.mrf.mxu0  ;;  %v1197_v48 = vmul.f32 %v2723_v39, %v1174_v60  ;;  %v745_v5 = vmax.f32 %v692_v61, 0.0  ;;  %v1158_v8 = vadd.f32 %v2146_v34, %v2529_v47 }
 0x107   : > { %v1153_v46 = vadd.f32 %v1152_v44, %v2533_v49  ;;  %v1196_v10 = vmul.f32 %v2723_v39, %v1173_v3  ;;  %v698_v11 = vadd.f32 %v697_v4, %v2537_v51  ;;  %v746_v21 = vmax.f32 %v696_v12, 0.0 }
 0x108   : > { %v789_v49 = vmul.f32 %v2628_v9, %v745_v5 }
 0x109   : > { %1234 = vrot.lane.b32.xlu0 %v1193_v13, %s2259_s25  ;;  %v1175_v50 = vmax.f32 %v1153_v46, 0.0  ;;  %v1176_v13 = vmax.f32 %v1158_v8, 0.0  ;;  %v747_v16 = vmax.f32 %v698_v11, 0.0  ;;  %v790_v24 = vmul.f32 %v2625_v6, %v746_v21 }
 0x10a   : > { %1232 = vrot.lane.b32.xlu1 %v1192_v20, %s2259_s25  ;;  %v1108_v20 = vadd.f32 %v2695_v41, %v2581_v58  ;;  %v1165_v41 = vmax.f32 %v1103_v27, 0.0  ;;  %v1098_v6 = vadd.f32 %v2685_v31, %v2620_v1  ;;  %v1088_v1 = vadd.f32 %v2675_v19, %v2632_v17 }
 0x10b   : > { %v1198_v47 = vmul.f32 %v2723_v39, %v1175_v50  ;;  %v1199_v52 = vmul.f32 %v2723_v39, %v1176_v13  ;;  %v791_v51 = vmul.f32 %v2628_v9, %v747_v16  ;;  %v1163_v31 = vmax.f32 %v1093_v57, 0.0 }
 0x10c   : > { %v1166_v7 = vmax.f32 %v1108_v20, 0.0  ;;  %v1164_v56 = vmax.f32 %v1098_v6, 0.0  ;;  %v1162_v59 = vmax.f32 %v1088_v1, 0.0 }
 0x10d   : > { %866 = vrot.lane.b32.xlu0 %v785_v25, %s2259_s25  ;;  %v775_v25 = vmul.f32 %v2628_v9, %v731_v22  ;;  %v1188_v9 = vmul.f32 %v2723_v39, %v1165_v41 }
 0x10e   : > { %870 = vrot.lane.b32.xlu1 %v787_v29, %s2259_s25  ;;  %v1189_v58 = vmul.f32 %v2723_v39, %v1166_v7  ;;  %v1185_v17 = vmul.f32 %v2723_v39, %v1162_v59 }
 0x111   : > { %868 = vrot.lane.b32.xlu0 %v786_v35, %s2259_s25 }
 0x112   : > { %1236 = vrot.lane.b32.xlu1 %v1194_v40, %s2259_s25 }
 0x115   : > { %1238 = vrot.lane.b32.xlu0 %v1195_v45, %s2259_s25 }
 0x116   : > { %872 = vrot.lane.b32.xlu1 %v788_v62, %s2259_s25 }
 0x119   : > { %1242 = vrot.lane.b32.xlu0 %v1197_v48, %s2259_s25 }
 0x11a   : > { %1240 = vrot.lane.b32.xlu1 %v1196_v10, %s2259_s25 }
 0x11d   : > { %874 = vrot.lane.b32.xlu0 %v789_v49, %s2259_s25 }
 0x11e   : > { %1244 = vrot.lane.b32.xlu1 %v1198_v47, %s2259_s25 }
 0x121   : > { %1246 = vrot.lane.b32.xlu0 %v1199_v52, %s2259_s25 }
 0x122   : > { %878 = vrot.lane.b32.xlu1 %v791_v51, %s2259_s25 }
 0x125   : > { %876 = vrot.lane.b32.xlu0 %v790_v24, %s2259_s25 }
 0x126   : > { %846 = vrot.lane.b32.xlu1 %v775_v25, %s2259_s25 }
 0x129   : > { %1226 = vrot.lane.b32.xlu0 %v1189_v58, %s2259_s25 }
 0x12a   : > { %840 = vrot.lane.b32.xlu1 %v2661_v63, %s2259_s25  ;;  %v1187_v63 = vmul.f32 %v2723_v39, %v1164_v56 }
 0x12d   : > { %842 = vrot.lane.b32.xlu0 %v2672_v14, %s2259_s25  ;;  %v1083_v14 = vadd.f32 %v2680_v23, %v2622_v2 }
 0x12e   : > { %1224 = vrot.lane.b32.xlu1 %v1188_v9, %s2259_s25 }
 0x12f   : > { %v1161_v33 = vmax.f32 %v1083_v14, 0.0 }
 0x131   : > { %836 = vrot.lane.b32.xlu0 %v2651_v38, %s2259_s25  ;;  %v1186_v38 = vmul.f32 %v2723_v39, %v1163_v31  ;;  %v1184_v2 = vmul.f32 %v2723_v39, %v1161_v33 }
 0x132   : > { %838 = vrot.lane.b32.xlu1 %v2655_v42, %s2259_s25 }
 0x135   : > { %1222 = vrot.lane.b32.xlu0 %v1187_v63, %s2259_s25 }
 0x136   : > { %832 = vrot.lane.b32.xlu1 %v2635_v18, %s2259_s25  ;;  %v1290_v18 = vld [vmem:[%s3139_s6] sm:$0xff] }
 0x139   : > { %834 = vrot.lane.b32.xlu0 %v2641_v26, %s2259_s25 }
 0x13a   : > { %1220 = vrot.lane.b32.xlu1 %v1186_v38, %s2259_s25 }
 0x13d   : > { %1218 = vrot.lane.b32.xlu0 %v1185_v17, %s2259_s25 }
 0x13e   : > { %1216 = vrot.lane.b32.xlu1 %v1184_v2, %s2259_s25  ;;  %s3029_s25 = scalar_lea.vmem %s3134_s1, %s2068_s22 }
 0x141   : > { %1572 = vperm.xlu0 %2247, %v1290_v18  }
 0x151   : > { %v881_v26 = vpop.permute.xlu1 %880 }
 0x152   : > { %997 = vst.msk [vmem:[#allocation2 + $0x120] sm:$0xff] %vm960_vm5, %v881_v26 }
 0x153   : > { %v883_v42 = vpop.permute.xlu0 %882 }
 0x154   : > { %v908_v19 = vsel %vm353_vm2, %v881_v26, %v883_v42  ;;  %999 = vst.msk [vmem:[#allocation2 + $0x130] sm:$0xff] %vm353_vm2, %v883_v42 }
 0x157   : > { %v885_v23 = vpop.permute.xlu0 %884  ;;  %v887_v39 = vpop.permute.xlu1 %886 }
 0x158   : > { %1000 = vst.msk [vmem:[#allocation2 + $0x138] sm:$0xff] %vm960_vm5, %v885_v23  ;;  %v909_v28 = vsel %vm353_vm2, %v885_v23, %v887_v39 }
 0x159   : > { %1002 = vst.msk [vmem:[#allocation2 + $0x148] sm:$0xff] %vm353_vm2, %v887_v39  ;;  %v1329_v3 = vld [vmem:[#allocation2 + $0x120] sm:$0xff] }
 0x15b   : > { %v889_v29 = vpop.permute.xlu0 %888 }
 0x15c   : > { %1003 = vst.msk [vmem:[#allocation2 + $0x150] sm:$0xff] %vm960_vm5, %v889_v29  ;;  %v891_v30 = vpop.permute.xlu1 %890 }
 0x15d   : > { %v910_v53 = vsel %vm353_vm2, %v889_v29, %v891_v30  ;;  %1005 = vst.msk [vmem:[#allocation2 + $0x160] sm:$0xff] %vm353_vm2, %v891_v30 }
 0x15f   : > { %v893_v32 = vpop.permute.xlu0 %892  ;;  %v1332_v60 = vld [vmem:[#allocation2 + $0x138] sm:$0xff] }
 0x160   : > { %1006 = vst.msk [vmem:[#allocation2 + $0x168] sm:$0xff] %vm960_vm5, %v893_v32  ;;  %v895_v34 = vpop.permute.xlu1 %894 }
 0x161   : > { %v911_v35 = vsel %vm353_vm2, %v893_v32, %v895_v34  ;;  %1008 = vst.msk [vmem:[#allocation2 + $0x178] sm:$0xff] %vm353_vm2, %v895_v34 }
 0x162   : > { %1341 = vmatprep.subr.mxu1 %v911_v35 }
 0x163   : > { %v2835_v36 = vpop.permute.xlu0 %844  ;;  %v1335_v44 = vld [vmem:[#allocation2 + $0x150] sm:$0xff] }
 0x164   : > { %v849_v54 = vpop.permute.xlu1 %848  ;;  %970 = vst.msk [vmem:[#allocation2 + $0x48] sm:$0xff] %vm960_vm5, %v2835_v36 }
 0x165   : > { %973 = vst.msk [vmem:[#allocation2 + $0x60] sm:$0xff] %vm960_vm5, %v849_v54 }
 0x167   : > { %v851_v40 = vpop.permute.xlu0 %850  ;;  %v1338_v43 = vld [vmem:[#allocation2 + $0x168] sm:$0xff] }
 0x168   : > { %v855_v37 = vpop.permute.xlu1 %854  ;;  %v2841_v55 = vsel %vm353_vm2, %v849_v54, %v851_v40  ;;  %975 = vst.msk [vmem:[#allocation2 + $0x70] sm:$0xff] %vm353_vm2, %v851_v40  ;;  %1342 = vmatpush1.msra.mxu1 %v1338_v43 }
 0x169   : > { %978 = vst.msk [vmem:[#allocation2 + $0x88] sm:$0xff] %vm353_vm2, %v855_v37  ;;  %1343 = vmatprep.subr.mxu1 %v910_v53 }
 0x16a   : > { %1344 = vmatpush1.msra.mxu1 %v1335_v44 }
 0x16b   : > { %v853_v45 = vpop.permute.xlu0 %852  ;;  %1345 = vmatprep.subr.mxu1 %v909_v28 }
 0x16c   : > { %v857_v61 = vpop.permute.xlu1 %856  ;;  %v2846_v62 = vsel %vm353_vm2, %v853_v45, %v855_v37  ;;  %976 = vst.msk [vmem:[#allocation2 + $0x78] sm:$0xff] %vm960_vm5, %v853_v45  ;;  %1346 = vmatpush1.msra.mxu1 %v1332_v60 }
 0x16d   : > { %979 = vst.msk [vmem:[#allocation2 + $0x90] sm:$0xff] %vm960_vm5, %v857_v61  ;;  %1347 = vmatprep.subr.mxu1 %v908_v19 }
 0x16e   : > { %1348 = vmatpush1.msra.mxu1 %v1329_v3 }
 0x16f   : > { %v859_v46 = vpop.permute.xlu0 %858 }
 0x170   : > { %v863_v4 = vpop.permute.xlu1 %862  ;;  %v2851_v48 = vsel %vm353_vm2, %v857_v61, %v859_v46  ;;  %981 = vst.msk [vmem:[#allocation2 + $0xa0] sm:$0xff] %vm353_vm2, %v859_v46  ;;  %v1305_v61 = vld [vmem:[#allocation2 + $0x60] sm:$0xff]  ;;  %v1302_v46 = vld [vmem:[#allocation2 + $0x48] sm:$0xff] }
 0x171   : > { %984 = vst.msk [vmem:[#allocation2 + $0xb8] sm:$0xff] %vm353_vm2, %v863_v4 }
 0x173   : > { %v861_v5 = vpop.permute.xlu0 %860  ;;  %v1308_v37 = vld [vmem:[#allocation2 + $0x78] sm:$0xff] }
 0x174   : > { %v1229_v8 = vpop.permute.xlu1 %1228  ;;  %v2856_v10 = vsel %vm353_vm2, %v861_v5, %v863_v4  ;;  %982 = vst.msk [vmem:[#allocation2 + $0xa8] sm:$0xff] %vm960_vm5, %v861_v5  ;;  %v1311_v54 = vld [vmem:[#allocation2 + $0x90] sm:$0xff] }
 0x175   : > { %1271 = vst.msk [vmem:[#allocation2 + $0xa0] sm:$0xff] %vm1264_vm6, %v1229_v8 }
 0x177   : > { %v1231_v11 = vpop.permute.xlu0 %1230 }
 0x178   : > { %v865_v50 = vpop.permute.xlu1 %864  ;;  %1272 = vst.msk [vmem:[#allocation2 + $0xb8] sm:$0xff] %vm1264_vm6, %v1231_v11 }
 0x179   : > { %985 = vst.msk [vmem:[#allocation2 + $0xc0] sm:$0xff] %vm960_vm5, %v865_v50 }
 0x17b   : > { %v1235_v49 = vpop.permute.xlu0 %1234  ;;  %v1314_v34 = vld [vmem:[#allocation2 + $0xa8] sm:$0xff] }
 0x17c   : > { %v1233_v12 = vpop.permute.xlu1 %1232  ;;  %v1313_v60 = vld [vmem:[#allocation2 + $0xa0] sm:$0xff] }
 0x17f   : > { %v867_v13 = vpop.permute.xlu0 %866  ;;  %v1316_v43 = vld [vmem:[#allocation2 + $0xb8] sm:$0xff] }
 0x180   : > { %v871_v15 = vpop.permute.xlu1 %870  ;;  %v2863_v16 = vsel %vm353_vm2, %v865_v50, %v867_v13  ;;  %987 = vst.msk [vmem:[#allocation2 + $0xd0] sm:$0xff] %vm353_vm2, %v867_v13  ;;  %v1317_v30 = vld [vmem:[#allocation2 + $0xc0] sm:$0xff] }
 0x181   : > { %990 = vst.msk [vmem:[#allocation2 + $0xe8] sm:$0xff] %vm353_vm2, %v871_v15 }
 0x182   : > { %1273 = vst.msk [vmem:[#allocation2 + $0xd0] sm:$0xff] %vm1264_vm6, %v1233_v12  ;;  %1274 = vst.msk [vmem:[#allocation2 + $0xe8] sm:$0xff] %vm1264_vm6, %v1235_v49  ;;  %v1282_v12 = vld [vmem:[%s3138_s5 + $0x8] sm:$0xff] }
 0x183   : > { %v869_v47 = vpop.permute.xlu0 %868 }
 0x184   : > { %v1237_v20 = vpop.permute.xlu1 %1236  ;;  %v905_v21 = vsel %vm353_vm2, %v869_v47, %v871_v15  ;;  %988 = vst.msk [vmem:[#allocation2 + $0xd8] sm:$0xff] %vm960_vm5, %v869_v47  ;;  %v1283_v15 = vld [vmem:[%s3138_s5 + $0x10] sm:$0xff]  ;;  %v1285_v47 = vld [vmem:[%s3138_s5 + $0x20] sm:$0xff] }
 0x187   : > { %v1239_v52 = vpop.permute.xlu0 %1238 }
 0x188   : > { %v873_v22 = vpop.permute.xlu1 %872 }
 0x189   : > { %991 = vst.msk [vmem:[#allocation2 + $0xf0] sm:$0xff] %vm960_vm5, %v873_v22  ;;  %v1322_v32 = vld [vmem:[#allocation2 + $0xe8] sm:$0xff] }
 0x18b   : > { %v1243_v51 = vpop.permute.xlu0 %1242  ;;  %v1320_v23 = vld [vmem:[#allocation2 + $0xd8] sm:$0xff] }
 0x18c   : > { %v1241_v7 = vpop.permute.xlu1 %1240  ;;  %1278 = vst.msk [vmem:[#allocation2 + $0x148] sm:$0xff] %vm1264_vm6, %v1243_v51 }
 0x18d   : > { %1277 = vst.msk [vmem:[#allocation2 + $0x130] sm:$0xff] %vm1264_vm6, %v1241_v7 }
 0x18f   : > { %v875_v24 = vpop.permute.xlu0 %874 }
 0x190   : > { %v1245_v25 = vpop.permute.xlu1 %1244  ;;  %v906_v27 = vsel %vm353_vm2, %v873_v22, %v875_v24  ;;  %993 = vst.msk [vmem:[#allocation2 + $0x100] sm:$0xff] %vm353_vm2, %v875_v24  ;;  %v1323_v26 = vld [vmem:[#allocation2 + $0xf0] sm:$0xff]  ;;  %v1289_v22 = vld [vmem:[%s3138_s5 + $0x40] sm:$0xff] }
 0x191   : > { %1279 = vst.msk [vmem:[#allocation2 + $0x160] sm:$0xff] %vm1264_vm6, %v1245_v25  ;;  %1275 = vst.msk [vmem:[#allocation2 + $0x100] sm:$0xff] %vm1264_vm6, %v1237_v20  ;;  %v1286_v20 = vld [vmem:[%s3138_s5 + $0x28] sm:$0xff] }
 0x193   : > { %v1247_v58 = vpop.permute.xlu0 %1246  ;;  %v1334_v33 = vld [vmem:[#allocation2 + $0x148] sm:$0xff] }
 0x194   : > { %v879_v41 = vpop.permute.xlu1 %878  ;;  %1280 = vst.msk [vmem:[#allocation2 + $0x178] sm:$0xff] %vm1264_vm6, %v1247_v58  ;;  %v1331_v18 = vld [vmem:[#allocation2 + $0x130] sm:$0xff] }
 0x195   : > { %996 = vst.msk [vmem:[#allocation2 + $0x118] sm:$0xff] %vm353_vm2, %v879_v41 }
 0x196   : > { %1276 = vst.msk [vmem:[#allocation2 + $0x118] sm:$0xff] %vm1264_vm6, %v1239_v52  ;;  %v1288_v52 = vld [vmem:[%s3138_s5 + $0x38] sm:$0xff] }
 0x197   : > { %v877_v6 = vpop.permute.xlu0 %876 }
 0x198   : > { %v847_v9 = vpop.permute.xlu1 %846  ;;  %v907_v56 = vsel %vm353_vm2, %v877_v6, %v879_v41  ;;  %994 = vst.msk [vmem:[#allocation2 + $0x108] sm:$0xff] %vm960_vm5, %v877_v6  ;;  %v1337_v31 = vld [vmem:[#allocation2 + $0x160] sm:$0xff] }
 0x199   : > { %v2885_v57 = vsel %vm353_vm2, %v2835_v36, %v847_v9  ;;  %972 = vst.msk [vmem:[#allocation2 + $0x58] sm:$0xff] %vm353_vm2, %v847_v9  ;;  %1349 = vmatprep.subr.mxu1 %v907_v56  ;;  %v1325_v29 = vld [vmem:[#allocation2 + $0x100] sm:$0xff]  ;;  %v1319_v36 = vld [vmem:[#allocation2 + $0xd0] sm:$0xff] }
 0x19b   : > { %v1227_v1 = vpop.permute.xlu0 %1226  ;;  %v1340_v63 = vld [vmem:[#allocation2 + $0x178] sm:$0xff] }
 0x19c   : > { %1270 = vst.msk [vmem:[#allocation2 + $0x88] sm:$0xff] %vm1264_vm6, %v1227_v1  ;;  %v841_v14 = vpop.permute.xlu1 %840  ;;  %2148 = vmatpush3.msra.mxu0 %v1340_v63 }
 0x19d   : > { %967 = vst.msk [vmem:[#allocation2 + $0x30] sm:$0xff] %vm960_vm5, %v841_v14  ;;  %2149 = vmatprep.subr.mxu0 %v2257_v0  ;;  %v1328_v19 = vld [vmem:[#allocation2 + $0x118] sm:$0xff] }
 0x19e   : > { %2150 = vmatpush3.msra.mxu0 %v1337_v31 }
 0x19f   : > { %2151 = vmatprep.subr.mxu0 %v2257_v0  ;;  %v843_v59 = vpop.permute.xlu0 %842  ;;  %v1326_v38 = vld [vmem:[#allocation2 + $0x108] sm:$0xff] }
 0x1a0   : > { %v2893_v17 = vsel %vm353_vm2, %v841_v14, %v843_v59  ;;  %969 = vst.msk [vmem:[#allocation2 + $0x40] sm:$0xff] %vm353_vm2, %v843_v59  ;;  %v1225_v2 = vpop.permute.xlu1 %1224  ;;  %2152 = vmatpush3.msra.mxu0 %v1334_v33  ;;  %1350 = vmatpush1.msra.mxu1 %v1326_v38 }
 0x1a1   : > { %1269 = vst.msk [vmem:[#allocation2 + $0x70] sm:$0xff] %vm1264_vm6, %v1225_v2  ;;  %2153 = vmatprep.subr.mxu0 %v2257_v0  ;;  %1351 = vmatprep.subr.mxu1 %v906_v27 }
 0x1a2   : > { %2154 = vmatpush3.msra.mxu0 %v1331_v18  ;;  %1352 = vmatpush1.msra.mxu1 %v1323_v26 }
 0x1a3   : > { %2155 = vmatprep.subr.mxu0 %v2257_v0  ;;  %v837_v42 = vpop.permute.xlu0 %836  ;;  %1353 = vmatprep.subr.mxu1 %v905_v21  ;;  %v1310_v3 = vld [vmem:[#allocation2 + $0x88] sm:$0xff]  ;;  %v1287_v21 = vld [vmem:[%s3138_s5 + $0x30] sm:$0xff] }
 0x1a4   : > { %v839_v39 = vpop.permute.xlu1 %838  ;;  %964 = vst.msk [vmem:[#allocation2 + $0x18] sm:$0xff] %vm960_vm5, %v837_v42  ;;  %2156 = vmatpush3.msra.mxu0 %v1328_v19  ;;  %1354 = vmatpush1.msra.mxu1 %v1320_v23 }
 0x1a5   : > { %966 = vst.msk [vmem:[#allocation2 + $0x28] sm:$0xff] %vm353_vm2, %v839_v39  ;;  %v897_v28 = vsel %vm353_vm2, %v837_v42, %v839_v39  ;;  %2157 = vmatprep.subr.mxu0 %v2257_v0  ;;  %1355 = vmatprep.subr.mxu1 %v2863_v16  ;;  %v1284_v16 = vld [vmem:[%s3138_s5 + $0x18] sm:$0xff] }
 0x1a6   : > { %2158 = vmatpush3.msra.mxu0 %v1325_v29  ;;  %1356 = vmatpush1.msra.mxu1 %v1317_v30 }
 0x1a7   : > { %2159 = vmatprep.subr.mxu0 %v2257_v0  ;;  %v1223_v53 = vpop.permute.xlu0 %1222  ;;  %1357 = vmatprep.subr.mxu1 %v2856_v10  ;;  %v1281_v10 = vld [vmem:[%s3138_s5] sm:$0xff] }
 0x1a8   : > { %1268 = vst.msk [vmem:[#allocation2 + $0x58] sm:$0xff] %vm1264_vm6, %v1223_v53  ;;  %v833_v35 = vpop.permute.xlu1 %832  ;;  %2160 = vmatpush3.msra.mxu0 %v1322_v32  ;;  %1358 = vmatpush1.msra.mxu1 %v1314_v34 }
 0x1a9   : > { %961 = vst.msk [vmem:[#allocation2] sm:$0xff] %vm960_vm5, %v833_v35  ;;  %2161 = vmatprep.subr.mxu0 %v2257_v0  ;;  %1359 = vmatprep.subr.mxu1 %v2851_v48  ;;  %v1299_v48 = vld [vmem:[#allocation2 + $0x30] sm:$0xff]  ;;  %vm1927_vm5 = vcmask 818176  }
 0x1aa   : > { %2162 = vmatpush3.msra.mxu0 %v1319_v36  ;;  %1360 = vmatpush1.msra.mxu1 %v1311_v54 }
 0x1ab   : > { %2163 = vmatprep.subr.mxu0 %v2257_v0  ;;  %v835_v40 = vpop.permute.xlu0 %834  ;;  %1361 = vmatprep.subr.mxu1 %v2846_v62  ;;  %v1296_v8 = vld [vmem:[#allocation2 + $0x18] sm:$0xff] }
 0x1ac   : > { %v896_v44 = vsel %vm353_vm2, %v833_v35, %v835_v40  ;;  %963 = vst.msk [vmem:[#allocation2 + $0x10] sm:$0xff] %vm353_vm2, %v835_v40  ;;  %v1221_v45 = vpop.permute.xlu1 %1220  ;;  %2164 = vmatpush3.msra.mxu0 %v1316_v43  ;;  %1362 = vmatpush1.msra.mxu1 %v1308_v37  ;;  %v1291_v40 = vld [vmem:[%s3140_s7] sm:$0xf]  ;;  %vm1781_vm2 = vcmask 519552  }
 0x1ad   : > { %1267 = vst.msk [vmem:[#allocation2 + $0x40] sm:$0xff] %vm1264_vm6, %v1221_v45  ;;  %2165 = vmatprep.subr.mxu0 %v2257_v0  ;;  %1363 = vmatprep.subr.mxu1 %v2841_v55  ;;  %v1307_v55 = vld [vmem:[#allocation2 + $0x70] sm:$0xff]  ;;  %v1292_v43 = vld [vmem:[%s3141_s8] sm:$0xf] }
 0x1ae   : > { %2166 = vmatpush3.msra.mxu0 %v1313_v60  ;;  %1364 = vmatpush1.msra.mxu1 %v1305_v61 }
 0x1af   : > { %2167 = vmatprep.subr.mxu0 %v2257_v0  ;;  %v1219_v62 = vpop.permute.xlu0 %1218  ;;  %1365 = vmatprep.subr.mxu1 %v2885_v57  ;;  %v1304_v5 = vld [vmem:[#allocation2 + $0x58] sm:$0xff] }
 0x1b0   : > { %1266 = vst.msk [vmem:[#allocation2 + $0x28] sm:$0xff] %vm1264_vm6, %v1219_v62  ;;  %v1217_v4 = vpop.permute.xlu1 %1216  ;;  %2168 = vmatpush3.msra.mxu0 %v1310_v3  ;;  %1366 = vmatpush1.msra.mxu1 %v1302_v46  ;;  %v1293_v50 = vld [vmem:[#allocation2] sm:$0xff] }
 0x1b1   : > { %1265 = vst.msk [vmem:[#allocation2 + $0x10] sm:$0xff] %vm1264_vm6, %v1217_v4  ;;  %2169 = vmatprep.subr.mxu0 %v2257_v0  ;;  %1367 = vmatprep.subr.mxu1 %v2893_v17  ;;  %vm1831_vm6 = vcmask 932864  }
 0x1b2   : > { %2170 = vmatpush3.msra.mxu0 %v1307_v55  ;;  %1368 = vmatpush1.msra.mxu1 %v1299_v48 }
 0x1b3   : > { %2171 = vmatprep.subr.mxu0 %v2257_v0  ;;  %1369 = vmatprep.subr.mxu1 %v897_v28 }
 0x1b4   : > { %2172 = vmatpush3.msra.mxu0 %v1304_v5  ;;  %1370 = vmatpush1.msra.mxu1 %v1296_v8  ;;  %v1301_v11 = vld [vmem:[#allocation2 + $0x40] sm:$0xff] }
 0x1b5   : > { %2173 = vmatprep.subr.mxu0 %v2257_v0  ;;  %1371 = vmatprep.subr.mxu1 %v896_v44 }
 0x1b6   : > { %2174 = vmatpush3.msra.mxu0 %v1301_v11  ;;  %1372 = vmatpush1.msra.mxu1 %v1293_v50 }
 0x1b7   : > { %2175 = vmatprep.subr.mxu0 %v2257_v0  ;;  %v1298_v49 = vld [vmem:[#allocation2 + $0x28] sm:$0xff]  ;;  %1406 = vmatmul.mubr.f32.vlgmr.msra.gmra.mxu1 %v1281_v10 }
 0x1b8   : > { %2176 = vmatpush3.msra.mxu0 %v1298_v49  ;;  %1411 = vmatprep.mubr.f32.mxu1 %v2257_v0  ;;  %v1295_v13 = vld [vmem:[#allocation2 + $0x10] sm:$0xff] }
 0x1b9   : > { %2177 = vmatprep.subr.mxu0 %v2257_v0 }
 0x1ba   : > { %2178 = vmatpush3.msra.mxu0 %v1295_v13 }
 0x1bb   : > { %2180 = vmatmul.mubr.f32.vlgmr.msra.gmra.mxu0 %v1281_v10  ;;  %1412 = vmatmul.mubr.f32.gmra.mxu1 %v1282_v12 }
 0x1bc   : > { %2182 = vmatprep.mubr.msk.f32.mxu0 %vm2260_vm4, %v2257_v0  ;;  %1417 = vmatprep.mubr.f32.mxu1 %v2257_v0  ;;  %v1573_v37 = vpop.permute.xlu0 %1572 }
 0x1bf   : > { %2183 = vmatmul.mubr.f32.gmra.mxu0 %v1282_v12  ;;  %1418 = vmatmul.mubr.f32.gmra.mxu1 %v1283_v15 }
 0x1c0   : > { %2185 = vmatprep.mubr.msk.f32.mxu0 %vm2260_vm4, %v2257_v0  ;;  %1423 = vmatprep.mubr.f32.mxu1 %v2257_v0 }
 0x1c3   : > { %2186 = vmatmul.mubr.f32.gmra.mxu0 %v1283_v15  ;;  %1424 = vmatmul.mubr.f32.gmra.mxu1 %v1284_v16 }
 0x1c4   : > { %2188 = vmatprep.mubr.msk.f32.mxu0 %vm2260_vm4, %v2257_v0  ;;  %1429 = vmatprep.mubr.f32.mxu1 %v2257_v0 }
 0x1c7   : > { %2189 = vmatmul.mubr.f32.gmra.mxu0 %v1284_v16  ;;  %1430 = vmatmul.mubr.f32.gmra.mxu1 %v1285_v47 }
 0x1c8   : > { %2191 = vmatprep.mubr.msk.f32.mxu0 %vm2260_vm4, %v2257_v0  ;;  %1435 = vmatprep.mubr.f32.mxu1 %v2257_v0 }
 0x1cb   : > { %2192 = vmatmul.mubr.f32.gmra.mxu0 %v1285_v47  ;;  %1436 = vmatmul.mubr.f32.gmra.mxu1 %v1286_v20 }
 0x1cc   : > { %2194 = vmatprep.mubr.msk.f32.mxu0 %vm2260_vm4, %v2257_v0  ;;  %1441 = vmatprep.mubr.f32.mxu1 %v2257_v0 }
 0x1cf   : > { %2195 = vmatmul.mubr.f32.gmra.mxu0 %v1286_v20  ;;  %1442 = vmatmul.mubr.f32.gmra.mxu1 %v1287_v21 }
 0x1d0   : > { %2197 = vmatprep.mubr.msk.f32.mxu0 %vm2260_vm4, %v2257_v0  ;;  %1447 = vmatprep.mubr.f32.mxu1 %v2257_v0 }
 0x1d3   : > { %2198 = vmatmul.mubr.f32.gmra.mxu0 %v1287_v21  ;;  %1448 = vmatmul.mubr.f32.gmra.mxu1 %v1288_v52 }
 0x1d4   : > { %2200 = vmatprep.mubr.msk.f32.mxu0 %vm2260_vm4, %v2257_v0  ;;  %1453 = vmatprep.mubr.f32.mxu1 %v2257_v0 }
 0x1d7   : > { %2201 = vmatmul.mubr.f32.gmra.mxu0 %v1288_v52  ;;  %1454 = vmatmul.mubr.f32.gmra.mxu1 %v1289_v22 }
 0x1d8   : > { %2203 = vmatprep.mubr.msk.f32.mxu0 %vm2260_vm4, %v2257_v0  ;;  %vm1807_vm4 = vcmask 781952  }
 0x1db   : > { %2204 = vmatmul.mubr.f32.gmra.mxu0 %v1289_v22 }
 0x277   : > { %v2978_v51 = vpop.f32.mrf.mxu1 }
 0x279   : > { %v2980_v7 = vpop.f32.mrf.mxu1 }
 0x27a   : > { %v1576_v15 = vadd.f32 %v1573_v37, %v2980_v7 }
 0x27b   : > { %v2982_v24 = vpop.f32.mrf.mxu0  ;;  %v1413_v25 = vpop.f32.mrf.mxu1 }
 0x27c   : > { %1581 = vrot.lane.b32.xlu1 %v1413_v25, %s2261_s29  ;;  %v1577_v45 = vadd.f32 %v1573_v37, %v2982_v24  ;;  %v1575_v25 = vadd.f32 %v1573_v37, %v2978_v51 }
 0x27d   : > { %v2181_v27 = vpop.f32.mrf.mxu0  ;;  %v1415_v58 = vpop.f32.mrf.mxu1 }
 0x27f   : > { %v1531_v41 = vpop.f32.mrf.mxu0  ;;  %v1419_v6 = vpop.f32.mrf.mxu1 }
 0x280   : > { %1585 = vrot.lane.b32.xlu0 %v1531_v41, %s2261_s29  ;;  %1583 = vrot.lane.b32.xlu1 %v1415_v58, %s2261_s29 }
 0x281   : > { %v2184_v9 = vpop.f32.mrf.mxu0  ;;  %v1421_v56 = vpop.f32.mrf.mxu1 }
 0x283   : > { %v1536_v57 = vpop.f32.mrf.mxu0  ;;  %v1425_v0 = vpop.f32.mrf.mxu1 }
 0x284   : > { %1599 = vrot.lane.b32.xlu0 %v1419_v6, %s2262_s11  ;;  %1603 = vrot.lane.b32.xlu1 %v1536_v57, %s2262_s11 }
 0x285   : > { %v2187_v1 = vpop.f32.mrf.mxu0  ;;  %v1427_v63 = vpop.f32.mrf.mxu1 }
 0x287   : > { %v1541_v14 = vpop.f32.mrf.mxu0  ;;  %v1431_v31 = vpop.f32.mrf.mxu1 }
 0x288   : > { %1601 = vrot.lane.b32.xlu0 %v1421_v56, %s2262_s11  ;;  %1617 = vrot.lane.b32.xlu1 %v1425_v0, %s2263_s12 }
 0x289   : > { %v2190_v59 = vpop.f32.mrf.mxu0  ;;  %v1433_v38 = vpop.f32.mrf.mxu1 }
 0x28b   : > { %v1546_v33 = vpop.f32.mrf.mxu0  ;;  %v1437_v2 = vpop.f32.mrf.mxu1 }
 0x28c   : > { %1621 = vrot.lane.b32.xlu0 %v1541_v14, %s2263_s12  ;;  %1619 = vrot.lane.b32.xlu1 %v1427_v63, %s2263_s12 }
 0x28d   : > { %v2193_v17 = vpop.f32.mrf.mxu0  ;;  %v1439_v26 = vpop.f32.mrf.mxu1 }
 0x28f   : > { %v1551_v18 = vpop.f32.mrf.mxu0  ;;  %v1443_v23 = vpop.f32.mrf.mxu1 }
 0x290   : > { %1635 = vrot.lane.b32.xlu0 %v1431_v31, %s2264_s13  ;;  %1639 = vrot.lane.b32.xlu1 %v1546_v33, %s2264_s13 }
 0x291   : > { %v2196_v42 = vpop.f32.mrf.mxu0  ;;  %v1445_v29 = vpop.f32.mrf.mxu1 }
 0x293   : > { %v1556_v19 = vpop.f32.mrf.mxu0  ;;  %v1449_v53 = vpop.f32.mrf.mxu1 }
 0x294   : > { %1637 = vrot.lane.b32.xlu0 %v1433_v38, %s2264_s13  ;;  %1653 = vrot.lane.b32.xlu1 %v1437_v2, %s2265_s16  ;;  %s2272_s13 = smov 116  }
 0x295   : > { %v2199_v39 = vpop.f32.mrf.mxu0  ;;  %v1451_v35 = vpop.f32.mrf.mxu1 }
 0x297   : > { %v1561_v28 = vpop.f32.mrf.mxu0  ;;  %v1455_v36 = vpop.f32.mrf.mxu1 }
 0x298   : > { %1657 = vrot.lane.b32.xlu0 %v1551_v18, %s2265_s16  ;;  %1655 = vrot.lane.b32.xlu1 %v1439_v26, %s2265_s16 }
 0x299   : > { %v2202_v30 = vpop.f32.mrf.mxu0  ;;  %v1457_v54 = vpop.f32.mrf.mxu1 }
 0x29b   : > { %v1566_v32 = vpop.f32.mrf.mxu0 }
 0x29c   : > { %1671 = vrot.lane.b32.xlu0 %v1443_v23, %s2266_s14  ;;  %1675 = vrot.lane.b32.xlu1 %v1556_v19, %s2266_s14 }
 0x29d   : > { %v2205_v34 = vpop.f32.mrf.mxu0 }
 0x2a0   : > { %1673 = vrot.lane.b32.xlu0 %v1445_v29, %s2266_s14  ;;  %1689 = vrot.lane.b32.xlu1 %v1449_v53, %s2267_s15  ;;  %s2273_s14 = smov 118  }
 0x2a4   : > { %1693 = vrot.lane.b32.xlu0 %v1561_v28, %s2267_s15  ;;  %1691 = vrot.lane.b32.xlu1 %v1451_v35, %s2267_s15  ;;  %s2274_s15 = smov 112  }
 0x2a8   : > { %1709 = vrot.lane.b32.xlu0 %v1457_v54, %s2268_s17  ;;  %1711 = vrot.lane.b32.xlu1 %v1566_v32, %s2268_s17 }
 0x2ac   : > { %1707 = vrot.lane.b32.xlu0 %v1455_v36, %s2268_s17  ;;  %1725 = vperm.xlu1 %2248, %v1291_v40   ;;  %s2275_s17 = smov 106  }
 0x2b0   : > { %1731 = vperm.xlu0 %2247, %v1292_v43  }
 0x2ee   : > { %v1582_v44 = vpop.permute.xlu1 %1581 }
 0x2f2   : > { %v1586_v60 = vpop.permute.xlu0 %1585  ;;  %v1584_v61 = vpop.permute.xlu1 %1583 }
 0x2f3   : > { %v1595_v62 = vadd.f32 %v1586_v60, %v1577_v45  ;;  %v1589_v13 = vsel %vm1587_vm7, %v1584_v61, %v1586_v60  ;;  %v1588_v52 = vsel %vm1587_vm7, %v1582_v44, %v1584_v61  ;;  %vm1820_vm7 = vcmask 913152  }
 0x2f4   : > { %v1594_v47 = vadd.f32 %v1589_v13, %v1576_v15  ;;  %v1593_v6 = vadd.f32 %v1588_v52, %v1575_v25 }
 0x2f6   : > { %v1600_v3 = vpop.permute.xlu0 %1599  ;;  %v1604_v46 = vpop.permute.xlu1 %1603 }
 0x2f7   : > { %v1613_v22 = vadd.f32 %v1604_v46, %v1595_v62 }
 0x2fa   : > { %v1602_v4 = vpop.permute.xlu0 %1601  ;;  %v1618_v55 = vpop.permute.xlu1 %1617 }
 0x2fb   : > { %v1607_v16 = vsel %vm1605_vm8, %v1602_v4, %v1604_v46  ;;  %v1606_v58 = vsel %vm1605_vm8, %v1600_v3, %v1602_v4  ;;  %vm1843_vm8 = vcmask 1044352  }
 0x2fc   : > { %v1612_v27 = vadd.f32 %v1607_v16, %v1594_v47  ;;  %v1611_v14 = vadd.f32 %v1606_v58, %v1593_v6  ;;  %v1743_v47 = vld [vmem:[%s3029_s25] sm:$0xf] }
 0x2fd   : > { %v1757_v58 = vld [vmem:[%s3029_s25] sm:$0xf] }
 0x2fe   : > { %v1622_v48 = vpop.permute.xlu0 %1621  ;;  %v1620_v5 = vpop.permute.xlu1 %1619 }
 0x2ff   : > { %v1625_v24 = vsel %vm1623_vm9, %v1620_v5, %v1622_v48  ;;  %v1631_v41 = vadd.f32 %v1622_v48, %v1613_v22  ;;  %v1624_v0 = vsel %vm1623_vm9, %v1618_v55, %v1620_v5 }
 0x300   : > { %v1630_v9 = vadd.f32 %v1625_v24, %v1612_v27  ;;  %v1629_v38 = vadd.f32 %v1624_v0, %v1611_v14  ;;  %v1770_v27 = vld [vmem:[%s3029_s25] sm:$0xf] }
 0x302   : > { %v1636_v8 = vpop.permute.xlu0 %1635  ;;  %v1640_v10 = vpop.permute.xlu1 %1639 }
 0x303   : > { %v1649_v1 = vadd.f32 %v1640_v10, %v1631_v41 }
 0x306   : > { %v1638_v11 = vpop.permute.xlu0 %1637  ;;  %v1654_v50 = vpop.permute.xlu1 %1653 }
 0x307   : > { %v1643_v7 = vsel %vm1641_vm10, %v1638_v11, %v1640_v10  ;;  %v1642_v51 = vsel %vm1641_vm10, %v1636_v8, %v1638_v11  ;;  %v1722_v10 = vld [vmem:[%s3029_s25] sm:$0xf] }
 0x308   : > { %v1648_v31 = vadd.f32 %v1643_v7, %v1630_v9  ;;  %v1647_v23 = vadd.f32 %v1642_v51, %v1629_v38 }
 0x30a   : > { %v1658_v49 = vpop.permute.xlu0 %1657  ;;  %v1656_v12 = vpop.permute.xlu1 %1655 }
 0x30b   : > { %v1661_v63 = vsel %vm1659_vm11, %v1656_v12, %v1658_v49  ;;  %v1667_v59 = vadd.f32 %v1658_v49, %v1649_v1  ;;  %v1660_v26 = vsel %vm1659_vm11, %v1654_v50, %v1656_v12 }
 0x30c   : > { %v1666_v17 = vadd.f32 %v1661_v63, %v1648_v31  ;;  %v1665_v30 = vadd.f32 %v1660_v26, %v1647_v23  ;;  %v1783_v31 = vld [vmem:[%s3029_s25] sm:$0xf]  ;;  %v1845_v26 = vld [vmem:[%s3029_s25 + $0x4] sm:$0xf] }
 0x30e   : > { %v1672_v20 = vpop.permute.xlu0 %1671  ;;  %v1676_v21 = vpop.permute.xlu1 %1675 }
 0x30f   : > { %v1685_v42 = vadd.f32 %v1676_v21, %v1667_v59 }
 0x312   : > { %v1674_v56 = vpop.permute.xlu0 %1673  ;;  %v1690_v57 = vpop.permute.xlu1 %1689 }
 0x313   : > { %v1679_v33 = vsel %vm1677_vm12, %v1674_v56, %v1676_v21  ;;  %v1678_v28 = vsel %vm1677_vm12, %v1672_v20, %v1674_v56 }
 0x314   : > { %v1684_v39 = vadd.f32 %v1679_v33, %v1666_v17  ;;  %v1683_v40 = vadd.f32 %v1678_v28, %v1665_v30  ;;  %v1858_v30 = vld [vmem:[%s3029_s25 + $0x4] sm:$0xf] }
 0x316   : > { %v1694_v2 = vpop.permute.xlu0 %1693  ;;  %v1692_v18 = vpop.permute.xlu1 %1691 }
 0x317   : > { %v1697_v19 = vsel %vm1695_vm13, %v1692_v18, %v1694_v2  ;;  %v1703_v29 = vadd.f32 %v1694_v2, %v1685_v42  ;;  %v1696_v35 = vsel %vm1695_vm13, %v1690_v57, %v1692_v18  ;;  %v1796_v2 = vld [vmem:[%s3029_s25] sm:$0xf] }
 0x318   : > { %v1702_v53 = vadd.f32 %v1697_v19, %v1684_v39  ;;  %v1701_v44 = vadd.f32 %v1696_v35, %v1683_v40 }
 0x31a   : > { %v1710_v32 = vpop.permute.xlu0 %1709  ;;  %v1712_v34 = vpop.permute.xlu1 %1711 }
 0x31b   : > { %v1715_v36 = vsel %vm1713_vm14, %v1710_v32, %v1712_v34  ;;  %v3015_v54 = vadd.f32 %v1712_v34, %v1703_v29 }
 0x31c   : > { %v1720_v43 = vadd.f32 %v1715_v36, %v1702_v53 }
 0x31d   : > { %v3018_v37 = vadd.f32 1.0, %v3015_v54  ;;  %v1947_v16 = vcombine.high %v3015_v54, %v3015_v54 }
 0x31e   : > { %v1825_v45 = vadd.f32 1.0, %v1720_v43  ;;  %v1932_v60 = vcombine.high %v1720_v43, %v3015_v54  ;;  %v1708_v61 = vpop.permute.xlu0 %1707  ;;  %v1852_v15 = vcombine.high %v1720_v43, %v1720_v43 }
 0x31f   : > { %v1714_v62 = vsel %vm1713_vm14, %v1708_v61, %v1710_v32 }
 0x320   : > { %v1719_v3 = vadd.f32 %v1714_v62, %v1701_v44  ;;  %v1923_v46 = vcombine.low %v1825_v45, %v3018_v37  ;;  %v1870_v44 = vld [vmem:[%s3029_s25 + $0x4] sm:$0xf] }
 0x322   : > { %v1735_v4 = vadd.f32 1.0, %v1719_v3  ;;  %v1738_v55 = vcombine.high %v1719_v3, %v1719_v3  ;;  %v1836_v48 = vcombine.high %v1719_v3, %v1720_v43 }
 0x324   : > { %1751 = vrot.lane.b32.xlu1 %v1738_v55, %s2262_s11  ;;  %1747 = vrot.lane.b32.xlu0 %v1735_v4, %s2262_s11  ;;  %v1827_v5 = vcombine.low %v1735_v4, %v1825_v45  ;;  %s3041_s11 = scalar_lea.vmem %s3142_s9, %s2068_s22 }
 0x327   : > { %v3031_v8 = vpop.permute.xlu1 %1725 }
 0x328   : > { %1786 = vrot.lane.b32.xlu1 %v1735_v4, %s2269_s26  ;;  %1760 = vrot.lane.b32.xlu0 %v1735_v4, %s2270_s27  ;;  %v1728_v50 = vsub.f32 %v1722_v10, %v3031_v8  ;;  %v1744_v20 = vsub.f32 %v1743_v47, %v3031_v8  ;;  %v1771_v6 = vsub.f32 %v1770_v27, %v3031_v8  ;;  %v1894_v47 = vld [vmem:[%s3029_s25 + $0x4] sm:$0xf] }
 0x329   : > { %v1758_v9 = vsub.f32 %v1757_v58, %v3031_v8  ;;  %v1784_v17 = vsub.f32 %v1783_v31, %v3031_v8  ;;  %v1797_v39 = vsub.f32 %v1796_v2, %v3031_v8  ;;  %v1846_v28 = vsub.f32 %v1845_v26, %v3031_v8 }
 0x32a   : > { %v1859_v40 = vsub.f32 %v1858_v30, %v3031_v8  ;;  %v1871_v3 = vsub.f32 %v1870_v44, %v3031_v8 }
 0x32b   : > { %v3034_v11 = vpop.permute.xlu0 %1731 }
 0x32c   : > { %1777 = vrot.lane.b32.xlu1 %v1738_v55, %s2271_s10  ;;  %1773 = vrot.lane.b32.xlu0 %v1735_v4, %s2271_s10  ;;  %v1734_v49 = vmul.f32 %v3034_v11, %v1728_v50  ;;  %v1745_v21 = vmul.f32 %v1744_v20, %v3034_v11  ;;  %v1772_v57 = vmul.f32 %v1771_v6, %v3034_v11 }
 0x32d   : > { %v1759_v1 = vmul.f32 %v1758_v9, %v3034_v11  ;;  %v1785_v19 = vmul.f32 %v1784_v17, %v3034_v11  ;;  %v1798_v32 = vmul.f32 %v1797_v39, %v3034_v11  ;;  %v1847_v34 = vmul.f32 %v1846_v28, %v3034_v11  ;;  %v1809_v9 = vld [vmem:[%s3029_s25] sm:$0xf] }
 0x32e   : > { %v1736_v12 = vmul.f32 %v1735_v4, %v1734_v49 }
 0x330   : > { %1812 = vrot.lane.b32.xlu1 %v1735_v4, %s2272_s13  ;;  %1764 = vrot.lane.b32.xlu0 %v1738_v55, %s2270_s27  ;;  %v1740_v13 = vadd.f32 %v1738_v55, %v1736_v12 }
 0x332   : > { %1742 = vst.msk [vmem:[%s3041_s11] sm:$0xf] %vm1741_vm15, %v1740_v13 }
 0x334   : > { %1799 = vrot.lane.b32.xlu0 %v1735_v4, %s2273_s14  ;;  %1848 = vrot.lane.b32.xlu1 %v1825_v45, %s2274_s15 }
 0x338   : > { %1790 = vrot.lane.b32.xlu0 %v1738_v55, %s2269_s26  ;;  %1861 = vrot.lane.b32.xlu1 %v1825_v45, %s2263_s12 }
 0x33c   : > { %1803 = vrot.lane.b32.xlu0 %v1738_v55, %s2273_s14  ;;  %1853 = vrot.lane.b32.xlu1 %v1852_v15, %s2274_s15 }
 0x340   : > { %1873 = vrot.lane.b32.xlu0 %v1825_v45, %s2265_s16  ;;  %1865 = vrot.lane.b32.xlu1 %v1852_v15, %s2263_s12  ;;  %s2280_s12 = smov 98  }
 0x344   : > { %1885 = vrot.lane.b32.xlu0 %v1825_v45, %s2275_s17  ;;  %1877 = vrot.lane.b32.xlu1 %v1852_v15, %s2265_s16 }
 0x348   : > { %1897 = vrot.lane.b32.xlu0 %v1825_v45, %s2276_s18  ;;  %1889 = vrot.lane.b32.xlu1 %v1852_v15, %s2275_s17 }
 0x34c   : > { %1909 = vrot.lane.b32.xlu0 %v1825_v45, %s2277_s19  ;;  %1933 = vrot.lane.b32.xlu1 %v1932_v60, %s2278_s20  ;;  %v1860_v45 = vmul.f32 %v1859_v40, %v3034_v11 }
 0x350   : > { %1837 = vrot.lane.b32.xlu0 %v1836_v48, %s2279_s21  ;;  %1901 = vrot.lane.b32.xlu1 %v1852_v15, %s2276_s18  ;;  %v1872_v48 = vmul.f32 %v1871_v3, %v3034_v11 }
 0x354   : > { %1924 = vrot.lane.b32.xlu1 %v1923_v46, %s2278_s20  ;;  %1828 = vrot.lane.b32.xlu0 %v1827_v5, %s2279_s21 }
 0x358   : > { %1913 = vrot.lane.b32.xlu1 %v1852_v15, %s2277_s19  ;;  %1943 = vrot.lane.b32.xlu0 %v3018_v37, %s2280_s12 }
 0x35c   : > { %1816 = vrot.lane.b32.xlu1 %v1738_v55, %s2272_s13  ;;  %1948 = vrot.lane.b32.xlu0 %v1947_v16, %s2280_s12  ;;  %v1882_v55 = vld [vmem:[%s3029_s25 + $0x4] sm:$0xf] }
 0x35d   : > { %v1883_v50 = vsub.f32 %v1882_v55, %v3031_v8 }
 0x35f   : > { %v1884_v13 = vmul.f32 %v1883_v50, %v3034_v11 }
 0x396   : > { %v1748_v52 = vpop.permute.xlu0 %1747  ;;  %v1752_v22 = vpop.permute.xlu1 %1751 }
 0x397   : > { %v1750_v24 = vmul.f32 %v1748_v52, %v1745_v21 }
 0x399   : > { %v1754_v25 = vadd.f32 %v1752_v22, %v1750_v24  ;;  %v1895_v22 = vsub.f32 %v1894_v47, %v3031_v8 }
 0x39a   : > { %v1761_v41 = vpop.permute.xlu0 %1760  ;;  %v1787_v7 = vpop.permute.xlu1 %1786 }
 0x39b   : > { %1756 = vst.msk [vmem:[%s3041_s11] sm:$0xf] %vm1755_vm0, %v1754_v25  ;;  %v1763_v14 = vmul.f32 %v1761_v41, %v1759_v1  ;;  %v1789_v23 = vmul.f32 %v1787_v7, %v1785_v19  ;;  %v1896_v27 = vmul.f32 %v1895_v22, %v3034_v11  ;;  %v1906_v41 = vld [vmem:[%s3029_s25 + $0x4] sm:$0xf] }
 0x39c   : > { %v1907_v1 = vsub.f32 %v1906_v41, %v3031_v8 }
 0x39e   : > { %v1774_v56 = vpop.permute.xlu0 %1773  ;;  %v1778_v0 = vpop.permute.xlu1 %1777  ;;  %v1908_v17 = vmul.f32 %v1907_v1, %v3034_v11 }
 0x39f   : > { %v1776_v63 = vmul.f32 %v1774_v56, %v1772_v57  ;;  %v1822_v57 = vld [vmem:[%s3029_s25] sm:$0xf] }
 0x3a1   : > { %v1780_v38 = vadd.f32 %v1778_v0, %v1776_v63  ;;  %v1918_v0 = vld [vmem:[%s3029_s25 + $0x4] sm:$0xf] }
 0x3a2   : > { %v1765_v51 = vpop.permute.xlu0 %1764  ;;  %v3066_v59 = vpop.permute.xlu1 %1812  ;;  %v1940_v63 = vld [vmem:[%s3029_s25 + $0x4] sm:$0xf] }
 0x3a3   : > { %v1767_v33 = vadd.f32 %v1765_v51, %v1763_v14  ;;  %v1810_v14 = vsub.f32 %v1809_v9, %v3031_v8  ;;  %v1823_v51 = vsub.f32 %v1822_v57, %v3031_v8  ;;  %v1941_v19 = vsub.f32 %v1940_v63, %v3031_v8 }
 0x3a5   : > { %1769 = vst.msk [vmem:[%s3041_s11] sm:$0xf] %vm1768_vm1, %v1767_v33  ;;  %v1919_v33 = vsub.f32 %v1918_v0, %v3031_v8  ;;  %v1824_v30 = vmul.f32 %v1823_v51, %v3034_v11 }
 0x3a6   : > { %v1800_v18 = vpop.permute.xlu0 %1799  ;;  %v1849_v42 = vpop.permute.xlu1 %1848  ;;  %1782 = vst.msk [vmem:[%s3041_s11] sm:$0xf] %vm1781_vm2, %v1780_v38 }
 0x3a7   : > { %v1802_v36 = vmul.f32 %v1800_v18, %v1798_v32  ;;  %v1851_v54 = vmul.f32 %v1849_v42, %v1847_v34  ;;  %v1920_v42 = vmul.f32 %v1919_v33, %v3034_v11  ;;  %v1942_v34 = vmul.f32 %v1941_v19, %v3034_v11 }
 0x3aa   : > { %v1791_v29 = vpop.permute.xlu0 %1790  ;;  %v1862_v53 = vpop.permute.xlu1 %1861 }
 0x3ab   : > { %v1793_v35 = vadd.f32 %v1791_v29, %v1789_v23  ;;  %v1864_v62 = vmul.f32 %v1862_v53, %v1860_v45  ;;  %v1811_v29 = vmul.f32 %v1810_v14, %v3034_v11 }
 0x3ad   : > { %1795 = vst.msk [vmem:[%s3041_s11] sm:$0xf] %vm1794_vm3, %v1793_v35 }
 0x3ae   : > { %v1804_v43 = vpop.permute.xlu0 %1803  ;;  %v1854_v37 = vpop.permute.xlu1 %1853 }
 0x3af   : > { %v1806_v60 = vadd.f32 %v1804_v43, %v1802_v36  ;;  %v1856_v61 = vadd.f32 %v1854_v37, %v1851_v54  ;;  %v1815_v37 = vmul.f32 %v3066_v59, %v1811_v29 }
 0x3b1   : > { %1857 = vst.msk [vmem:[%s3041_s11 + $0x4] sm:$0xf] %vm1741_vm15, %v1856_v61 }
 0x3b2   : > { %1808 = vst.msk [vmem:[%s3041_s11] sm:$0xf] %vm1807_vm4, %v1806_v60  ;;  %v1874_v46 = vpop.permute.xlu0 %1873  ;;  %v1866_v4 = vpop.permute.xlu1 %1865 }
 0x3b3   : > { %v1868_v5 = vadd.f32 %v1866_v4, %v1864_v62  ;;  %v1876_v10 = vmul.f32 %v1874_v46, %v1872_v48 }
 0x3b5   : > { %1869 = vst.msk [vmem:[%s3041_s11 + $0x4] sm:$0xf] %vm1755_vm0, %v1868_v5 }
 0x3b6   : > { %v1886_v49 = vpop.permute.xlu0 %1885  ;;  %v1878_v12 = vpop.permute.xlu1 %1877 }
 0x3b7   : > { %v1880_v15 = vadd.f32 %v1878_v12, %v1876_v10  ;;  %v1888_v16 = vmul.f32 %v1886_v49, %v1884_v13 }
 0x3b9   : > { %1881 = vst.msk [vmem:[%s3041_s11 + $0x4] sm:$0xf] %vm1768_vm1, %v1880_v15 }
 0x3ba   : > { %v1898_v20 = vpop.permute.xlu0 %1897  ;;  %v1890_v21 = vpop.permute.xlu1 %1889 }
 0x3bb   : > { %v1892_v52 = vadd.f32 %v1890_v21, %v1888_v16  ;;  %v1900_v58 = vmul.f32 %v1898_v20, %v1896_v27 }
 0x3bd   : > { %1893 = vst.msk [vmem:[%s3041_s11 + $0x4] sm:$0xf] %vm1781_vm2, %v1892_v52 }
 0x3be   : > { %v1910_v24 = vpop.permute.xlu0 %1909  ;;  %v1934_v25 = vpop.permute.xlu1 %1933 }
 0x3bf   : > { %v1935_v2 = vrot.slane %v1934_v25, 4  ;;  %v1912_v23 = vmul.f32 %v1910_v24, %v1908_v17 }
 0x3c1   : > { %v1936_v36 = vsel %vm1927_vm5, %v1934_v25, %v1935_v2 }
 0x3c2   : > { %v1838_v7 = vpop.permute.xlu0 %1837  ;;  %v1902_v6 = vpop.permute.xlu1 %1901 }
 0x3c3   : > { %v1904_v56 = vadd.f32 %v1902_v6, %v1900_v58  ;;  %v1839_v54 = vrot.slane %v1838_v7, 4 }
 0x3c5   : > { %1905 = vst.msk [vmem:[%s3041_s11 + $0x4] sm:$0xf] %vm1794_vm3, %v1904_v56  ;;  %v1840_v11 = vsel %vm1831_vm6, %v1838_v7, %v1839_v54 }
 0x3c6   : > { %v1829_v31 = vpop.permute.xlu0 %1828  ;;  %v1925_v38 = vpop.permute.xlu1 %1924 }
 0x3c7   : > { %v1830_v18 = vrot.slane %v1829_v31, 4  ;;  %v1926_v26 = vrot.slane %v1925_v38, 4 }
 0x3c9   : > { %v1832_v39 = vsel %vm1831_vm6, %v1829_v31, %v1830_v18  ;;  %v1928_v28 = vsel %vm1927_vm5, %v1925_v38, %v1926_v26 }
 0x3ca   : > { %v1930_v53 = vmul.f32 %v1928_v28, %v1920_v42  ;;  %v1944_v32 = vpop.permute.xlu0 %1943  ;;  %v1914_v35 = vpop.permute.xlu1 %1913  ;;  %v1834_v8 = vmul.f32 %v1832_v39, %v1824_v30 }
 0x3cb   : > { %v1916_v40 = vadd.f32 %v1914_v35, %v1912_v23  ;;  %v1946_v44 = vmul.f32 %v1944_v32, %v1942_v34 }
 0x3cc   : > { %v1938_v43 = vadd.f32 %v1936_v36, %v1930_v53  ;;  %v1842_v3 = vadd.f32 %v1840_v11, %v1834_v8 }
 0x3cd   : > { %1917 = vst.msk [vmem:[%s3041_s11 + $0x4] sm:$0xf] %vm1807_vm4, %v1916_v40 }
 0x3ce   : > { %v1949_v45 = vpop.permute.xlu0 %1948  ;;  %1939 = vst.msk [vmem:[%s3041_s11 + $0x4] sm:$0xf] %vm1820_vm7, %v1938_v43  ;;  %v1817_v60 = vpop.permute.xlu1 %1816 }
 0x3cf   : > { %v1951_v61 = vadd.f32 %v1949_v45, %v1946_v44  ;;  %v1819_v62 = vadd.f32 %v1817_v60, %v1815_v37 }
 0x3d1   : > { %1952 = vst.msk [vmem:[%s3041_s11 + $0x4] sm:$0xf] %vm1843_vm8, %v1951_v61 }
 0x3d2   : > { %1821 = vst.msk [vmem:[%s3041_s11] sm:$0xf] %vm1820_vm7, %v1819_v62 }
 0x3d3   : > { %1844 = vst.msk [vmem:[%s3041_s11] sm:$0xf] %vm1843_vm8, %v1842_v3 }
 0x3d4 PF: > { %s19_s30 = sadd.s32 1, %s2255_s30  }
 0x3d5   : > { %p16_p4 = scmp.ge.s32.totalorder %s19_s30, 4  }
 0x3d7   :  { %18 = sbr.rel (!%p16_p4) target bundleno = 1 (0x1), region = 89 }

</bundles_post_ra>
